<compile_context>
chip_gen: v5e
topology: v5e:2x2
jax: 0.10.0
libtpu: 0.0.40
codegen_flags: <defaults>
</compile_context>

<pallas_src>
import functools

import jax
import jax.numpy as jnp
from jax.experimental import pallas as pl
from jax.experimental.pallas import tpu as pltpu

LEAKY_SLOPE = 0.02      # nn.LeakyReLU(0.02) in LinearAffineModule
BN_EPS = 1e-5           # nn.BatchNorm1d default eps


def _leaky(x, slope=LEAKY_SLOPE):
    # leaky_relu with positive slope < 1  ==  max(x, slope * x)
    return jnp.maximum(x, slope * x)


def _pick_block(total, candidates):
    """Largest candidate that divides `total`; fall back to the full dim."""
    for c in candidates:
        if c <= total and total % c == 0:
            return c
    return total


def encoder_gaussian_kernel(
    inv_p,                     # static python float: 1 / (H*W)
    x_ref,                     # [bn, C, bp]  lane-dense input tile (HW on lanes)
    wc_ref, bc_ref,            # SMEM 1x1 conv:           [C, F], [1, F]
    wf_ref, bf_ref,            # model_func head linear:  [F, M], [1, M]
    w1_ref, b1_ref,            # conv_fc linear (BN-folded): [M, M], [1, M]
    wz_ref, bz_ref,            # z_linear:                [M, 2L], [1, 2L]
    wa_ref, ba_ref,            # fc_affine_layer:         [2L, 2L], [1, 2L]
    out_ref,                   # [bn, 2L]  packed (mu | sigma)
    pool_ref,                  # VMEM scratch [bn, F]: running spatial sum
):
    j = pl.program_id(1)                      # spatial-tile index (reduction axis)
    bn, C, bp = x_ref.shape
    F = wc_ref.shape[1]
    L = out_ref.shape[-1] // 2

    @pl.when(j == 0)
    def _init():
        pool_ref[...] = jnp.zeros_like(pool_ref)

    # ---- 1x1 conv (C -> F) on the VPU + ReLU + partial spatial sum ----------
    # C and F are tiny, so the conv is C*F scalar-broadcast FMAs over the
    # lane-dense [bn, bp] planes; weights come from SMEM as scalars.
    xc = [x_ref[:, c, :] for c in range(C)]          # C loads of [bn, bp]
    cols = []
    for f in range(F):
        acc = xc[0] * wc_ref[0, f]
        for c in range(1, C):
            acc = acc + xc[c] * wc_ref[c, f]
        acc = jnp.maximum(acc + bc_ref[0, f], 0.0)    # ReLU
        cols.append(jnp.sum(acc, axis=-1, keepdims=True))   # [bn, 1] partial sum
    pool_ref[...] += jnp.concatenate(cols, axis=-1)   # accumulate [bn, F]

    # ---- finalize on the last spatial tile: tiny dense chain + gaussian head
    @pl.when(j == pl.num_programs(1) - 1)
    def _finalize():
        pooled = pool_ref[...] * inv_p                # global average pool [bn, F]
        feats = jnp.dot(pooled, wf_ref[...],
                        preferred_element_type=jnp.float32) + bf_ref[...]
        # conv_fc = Linear -> BatchNorm1d(eval, folded into w1/b1) -> LeakyReLU
        e = _leaky(jnp.dot(feats, w1_ref[...],
                           preferred_element_type=jnp.float32) + b1_ref[...])
        # z_linear (factorised=True): Linear -> LeakyReLU
        z = _leaky(jnp.dot(e, wz_ref[...],
                           preferred_element_type=jnp.float32) + bz_ref[...])
        # fc_affine_layer: plain Linear -> mu_log_sigma
        lv = jnp.dot(z, wa_ref[...],
                     preferred_element_type=jnp.float32) + ba_ref[...]   # [bn, 2L]
        # AxisAlignedConvGaussian: mu = lv[:, :L], sigma = exp(lv[:, L:]),
        # written as ONE lane-packed output with an iota mask (no lane-boundary
        # slices inside the kernel).
        lane = jax.lax.broadcasted_iota(jnp.int32, lv.shape, 1)
        out_ref[...] = jnp.where(lane < L, lv, jnp.exp(lv))


def axis_aligned_conv_gaussian(x_bdchw, params, latent_dim):
    """x_bdchw: [B, D, C, H, W] float32. Returns (mu [N,L], sigma [N,L]), N=B*D."""
    B, D, C, H, W = x_bdchw.shape
    N, P = B * D, H * W
    zw = 2 * latent_dim

    # NCHW already has H*W contiguous and last: [N, C, P] is a FREE reshape and
    # lane-dense.  No transpose, no extra HBM pass.
    x = x_bdchw.reshape(N, C, P).astype(jnp.float32)

    # Fold the eval-mode BatchNorm1d into the conv_fc Linear (exact in eval mode).
    w1 = params["w1"] * params["bn_scale"]
    b1 = params["b1"] * params["bn_scale"] + params["bn_shift"]

    F = params["wc"].shape[1]
    M = params["wf"].shape[1]

    bn_blk = _pick_block(N, (128, 64, 32, 16, 8))
    bp_blk = _pick_block(P, (512, 384, 256, 128))
    # TODO(synk): if P is huge and not a multiple of 128 the fallback is one
    # full-width spatial block; pad+mask the spatial axis if that exceeds VMEM.

    grid = (N // bn_blk, P // bp_blk)

    smem = pl.BlockSpec(memory_space=pltpu.MemorySpace.SMEM)

    def full(shape):
        return pl.BlockSpec(shape, lambda i, j: (0,) * len(shape))

    kernel = functools.partial(encoder_gaussian_kernel, 1.0 / P)

    musig = pl.pallas_call(
        kernel,
        out_shape=jax.ShapeDtypeStruct((N, zw), jnp.float32),
        grid_spec=pltpu.PrefetchScalarGridSpec(
            num_scalar_prefetch=0,
            grid=grid,
            in_specs=[
                pl.BlockSpec((bn_blk, C, bp_blk), lambda i, j: (i, 0, j)),  # x
                smem, smem,                         # wc, bc (scalar table in SMEM)
                full((F, M)), full((1, M)),         # wf, bf
                full((M, M)), full((1, M)),         # w1, b1 (BN folded)
                full((M, zw)), full((1, zw)),       # wz, bz
                full((zw, zw)), full((1, zw)),      # wa, ba
            ],
            out_specs=pl.BlockSpec((bn_blk, zw), lambda i, j: (i, 0)),
            scratch_shapes=[pltpu.VMEM((bn_blk, F), jnp.float32)],
        ),
        compiler_params=pltpu.CompilerParams(
            dimension_semantics=("parallel", "arbitrary")),
    )(x, params["wc"], params["bc"], params["wf"], params["bf"],
      w1, b1, params["wz"], params["bz"], params["wa"], params["ba"])

    mu = musig[:, :latent_dim]
    sigma = musig[:, latent_dim:]
    # TODO(synk): torch.distributions Independent(Normal(mu, sigma)) has no
    # Pallas equivalent; we return the distribution parameters.
    return mu, sigma


def init_params(key, C, F, M, latent_dim):
    """Deterministic parameter init (PyTorch-style uniform ±1/sqrt(fan_in))."""
    zw = 2 * latent_dim
    ks = jax.random.split(key, 16)

    def lin(kw, kb, fan_in, fan_out):
        bound = 1.0 / jnp.sqrt(jnp.float32(fan_in))
        w = jax.random.uniform(kw, (fan_in, fan_out), jnp.float32, -bound, bound)
        b = jax.random.uniform(kb, (1, fan_out), jnp.float32, -bound, bound)
        return w, b

    wc, bc = lin(ks[0], ks[1], C, F)        # model_func 1x1 conv
    wf, bf = lin(ks[2], ks[3], F, M)        # model_func head linear
    w1, b1 = lin(ks[4], ks[5], M, M)        # conv_fc linear
    wz, bz = lin(ks[6], ks[7], M, zw)       # z_linear
    # fc_affine_layer: xavier-ish init (init_type='xavier')
    xav = jnp.sqrt(6.0 / (zw + zw))
    wa = jax.random.uniform(ks[8], (zw, zw), jnp.float32, -xav, xav)
    ba = jnp.zeros((1, zw), jnp.float32)

    # BatchNorm1d (eval mode) with deterministic non-trivial affine/running stats.
    idx = jnp.arange(M, dtype=jnp.float32)
    gamma = 1.0 + 0.05 * jnp.sin(idx)
    beta = 0.02 * jnp.cos(idx)
    run_mean = 0.01 * idx / M
    run_var = 1.0 + 0.1 * (idx / M)
    bn_scale = (gamma / jnp.sqrt(run_var + BN_EPS)).reshape(1, M)
    bn_shift = (beta - run_mean * gamma / jnp.sqrt(run_var + BN_EPS)).reshape(1, M)

    return dict(wc=wc, bc=bc, wf=wf, bf=bf, w1=w1, b1=b1,
                bn_scale=bn_scale, bn_shift=bn_shift,
                wz=wz, bz=bz, wa=wa, ba=ba)


def reference_forward(x_bdchw, params, latent_dim):
    """Pure-JAX reference (unfolded BN) of the same forward pass."""
    B, D, C, H, W = x_bdchw.shape
    N, P = B * D, H * W
    x = x_bdchw.reshape(N, C, P)
    y = jnp.einsum("ncp,cf->npf", x, params["wc"]) + params["bc"][None]
    y = jnp.maximum(y, 0.0)
    pooled = jnp.mean(y, axis=1)
    feats = pooled @ params["wf"] + params["bf"]
    e = _leaky((feats @ params["w1"] + params["b1"]) * params["bn_scale"]
               + params["bn_shift"])
    z = _leaky(e @ params["wz"] + params["bz"])
    lv = z @ params["wa"] + params["ba"]
    L = latent_dim
    return lv[:, :L], jnp.exp(lv[:, L:])


if __name__ == "__main__":
    # Small shapes consistent with forward(): x = [bz, d, c, h, w]
    B, D, C, H, W = 2, 3, 4, 16, 16
    F_CH = 8          # synthetic model_func conv channels
    M = 64            # model_func.n_outputs
    LATENT_DIM = 16   # -> zw_dim = 32

    key = jax.random.PRNGKey(0)
    k_x, k_p = jax.random.split(key)
    x = jax.random.normal(k_x, (B, D, C, H, W), jnp.float32)
    params = init_params(k_p, C, F_CH, M, LATENT_DIM)

    mu, sigma = axis_aligned_conv_gaussian(x, params, LATENT_DIM)
    mu = jax.block_until_ready(mu)
    sigma = jax.block_until_ready(sigma)

    # Correctness check against the pure-JAX reference (unfolded BN).
    mu_ref, sigma_ref = reference_forward(x, params, LATENT_DIM)
    assert mu.shape == (B * D, LATENT_DIM) and sigma.shape == (B * D, LATENT_DIM)
    assert jnp.allclose(mu, mu_ref, atol=1e-4, rtol=1e-4)
    assert jnp.allclose(sigma, sigma_ref, atol=1e-4, rtol=1e-4)
    assert bool(jnp.all(sigma > 0.0))

    print("KERNEL_OK")
</pallas_src>

<mosaic_0001>
module attributes {stable_mosaic.version = 11 : i64} {
  func.func @encoder_gaussian_kernel(%arg0: i32, %arg1: i32, %arg2: memref<6x4x256xf32, #tpu.memory_space<vmem>>, %arg3: memref<4x8xf32, #tpu.memory_space<smem>>, %arg4: memref<1x8xf32, #tpu.memory_space<smem>>, %arg5: memref<8x64xf32, #tpu.memory_space<vmem>>, %arg6: memref<1x64xf32, #tpu.memory_space<vmem>>, %arg7: memref<64x64xf32, #tpu.memory_space<vmem>>, %arg8: memref<1x64xf32, #tpu.memory_space<vmem>>, %arg9: memref<64x32xf32, #tpu.memory_space<vmem>>, %arg10: memref<1x32xf32, #tpu.memory_space<vmem>>, %arg11: memref<32x32xf32, #tpu.memory_space<vmem>>, %arg12: memref<1x32xf32, #tpu.memory_space<vmem>>, %arg13: memref<6x32xf32, #tpu.memory_space<vmem>>, %arg14: memref<6x8xf32, #tpu.memory_space<vmem>>) attributes {dimension_semantics = [#tpu.dimension_semantics<parallel>, #tpu.dimension_semantics<arbitrary>], iteration_bounds = array<i64: 1, 1>, scalar_prefetch = 0 : i64, scratch_operands = 1 : i64, tpu.core_type = #tpu.core_type<tc>, window_params = [{transform_indices = @transform_0, window_bounds = array<i64: 6, 4, 256>}, {transform_indices = @transform_1, window_bounds = array<i64: 4, 8>}, {transform_indices = @transform_2, window_bounds = array<i64: 1, 8>}, {pipeline_mode = #tpu.pipeline_mode<synchronous>, transform_indices = @transform_3, window_bounds = array<i64: 8, 64>}, {pipeline_mode = #tpu.pipeline_mode<synchronous>, transform_indices = @transform_4, window_bounds = array<i64: 1, 64>}, {pipeline_mode = #tpu.pipeline_mode<synchronous>, transform_indices = @transform_5, window_bounds = array<i64: 64, 64>}, {pipeline_mode = #tpu.pipeline_mode<synchronous>, transform_indices = @transform_6, window_bounds = array<i64: 1, 64>}, {pipeline_mode = #tpu.pipeline_mode<synchronous>, transform_indices = @transform_7, window_bounds = array<i64: 64, 32>}, {pipeline_mode = #tpu.pipeline_mode<synchronous>, transform_indices = @transform_8, window_bounds = array<i64: 1, 32>}, {pipeline_mode = #tpu.pipeline_mode<synchronous>, transform_indices = @transform_9, window_bounds = array<i64: 32, 32>}, {pipeline_mode = #tpu.pipeline_mode<synchronous>, transform_indices = @transform_10, window_bounds = array<i64: 1, 32>}, {transform_indices = @transform_11, window_bounds = array<i64: 6, 32>}]} {
    %c0_i32 = arith.constant 0 : i32
    %0 = arith.cmpi eq, %arg1, %c0_i32 : i32
    %1 = arith.extui %0 : i1 to i32
    %c0_i32_0 = arith.constant 0 : i32
    %2 = arith.cmpi ne, %1, %c0_i32_0 : i32
    scf.if %2 {
      %cst_106 = arith.constant 0.000000e+00 : f32
      %194 = vector.broadcast %cst_106 : f32 to vector<6x8xf32>
      %c0_107 = arith.constant 0 : index
      %c0_108 = arith.constant 0 : index
      %195 = vector.load %arg14[%c0_107, %c0_108] : memref<6x8xf32, #tpu.memory_space<vmem>>, vector<6x8xf32>
      tpu.vector_store %arg14[%c0_107, %c0_108], %194 {strides = array<i32>} : memref<6x8xf32, #tpu.memory_space<vmem>>, vector<6x8xf32>,
    } else {
    }
    %c0 = arith.constant 0 : index
    %c0_1 = arith.constant 0 : index
    %c0_2 = arith.constant 0 : index
    %3 = vector.load %arg2[%c0, %c0_1, %c0_2] : memref<6x4x256xf32, #tpu.memory_space<vmem>>, vector<6x1x256xf32>
    %4 = vector.shape_cast %3 : vector<6x1x256xf32> to vector<6x256xf32>
    %c0_3 = arith.constant 0 : index
    %c1 = arith.constant 1 : index
    %c0_4 = arith.constant 0 : index
    %5 = vector.load %arg2[%c0_3, %c1, %c0_4] : memref<6x4x256xf32, #tpu.memory_space<vmem>>, vector<6x1x256xf32>
    %6 = vector.shape_cast %5 : vector<6x1x256xf32> to vector<6x256xf32>
    %c0_5 = arith.constant 0 : index
    %c2 = arith.constant 2 : index
    %c0_6 = arith.constant 0 : index
    %7 = vector.load %arg2[%c0_5, %c2, %c0_6] : memref<6x4x256xf32, #tpu.memory_space<vmem>>, vector<6x1x256xf32>
    %8 = vector.shape_cast %7 : vector<6x1x256xf32> to vector<6x256xf32>
    %c0_7 = arith.constant 0 : index
    %c3 = arith.constant 3 : index
    %c0_8 = arith.constant 0 : index
    %9 = vector.load %arg2[%c0_7, %c3, %c0_8] : memref<6x4x256xf32, #tpu.memory_space<vmem>>, vector<6x1x256xf32>
    %10 = vector.shape_cast %9 : vector<6x1x256xf32> to vector<6x256xf32>
    %c0_9 = arith.constant 0 : index
    %c0_10 = arith.constant 0 : index
    %11 = memref.load %arg3[%c0_9, %c0_10] : memref<4x8xf32, #tpu.memory_space<smem>>
    %12 = vector.broadcast %11 : f32 to vector<6x256xf32>
    %13 = arith.mulf %4, %12 : vector<6x256xf32>
    %c1_11 = arith.constant 1 : index
    %c0_12 = arith.constant 0 : index
    %14 = memref.load %arg3[%c1_11, %c0_12] : memref<4x8xf32, #tpu.memory_space<smem>>
    %15 = vector.broadcast %14 : f32 to vector<6x256xf32>
    %16 = arith.mulf %6, %15 : vector<6x256xf32>
    %17 = arith.addf %13, %16 : vector<6x256xf32>
    %c2_13 = arith.constant 2 : index
    %c0_14 = arith.constant 0 : index
    %18 = memref.load %arg3[%c2_13, %c0_14] : memref<4x8xf32, #tpu.memory_space<smem>>
    %19 = vector.broadcast %18 : f32 to vector<6x256xf32>
    %20 = arith.mulf %8, %19 : vector<6x256xf32>
    %21 = arith.addf %17, %20 : vector<6x256xf32>
    %c3_15 = arith.constant 3 : index
    %c0_16 = arith.constant 0 : index
    %22 = memref.load %arg3[%c3_15, %c0_16] : memref<4x8xf32, #tpu.memory_space<smem>>
    %23 = vector.broadcast %22 : f32 to vector<6x256xf32>
    %24 = arith.mulf %10, %23 : vector<6x256xf32>
    %25 = arith.addf %21, %24 : vector<6x256xf32>
    %c0_17 = arith.constant 0 : index
    %c0_18 = arith.constant 0 : index
    %26 = memref.load %arg4[%c0_17, %c0_18] : memref<1x8xf32, #tpu.memory_space<smem>>
    %27 = vector.broadcast %26 : f32 to vector<6x256xf32>
    %28 = arith.addf %25, %27 : vector<6x256xf32>
    %cst = arith.constant 0.000000e+00 : f32
    %29 = vector.broadcast %cst : f32 to vector<6x256xf32>
    %30 = arith.maximumf %28, %29 : vector<6x256xf32>
    %cst_19 = arith.constant dense<0.000000e+00> : vector<6xf32>
    %31 = vector.multi_reduction <add>, %30, %cst_19 [1] : vector<6x256xf32> to vector<6xf32>
    %32 = vector.shape_cast %31 : vector<6xf32> to vector<6x1xf32>
    %c0_20 = arith.constant 0 : index
    %c1_21 = arith.constant 1 : index
    %33 = memref.load %arg3[%c0_20, %c1_21] : memref<4x8xf32, #tpu.memory_space<smem>>
    %34 = vector.broadcast %33 : f32 to vector<6x256xf32>
    %35 = arith.mulf %4, %34 : vector<6x256xf32>
    %c1_22 = arith.constant 1 : index
    %c1_23 = arith.constant 1 : index
    %36 = memref.load %arg3[%c1_22, %c1_23] : memref<4x8xf32, #tpu.memory_space<smem>>
    %37 = vector.broadcast %36 : f32 to vector<6x256xf32>
    %38 = arith.mulf %6, %37 : vector<6x256xf32>
    %39 = arith.addf %35, %38 : vector<6x256xf32>
    %c2_24 = arith.constant 2 : index
    %c1_25 = arith.constant 1 : index
    %40 = memref.load %arg3[%c2_24, %c1_25] : memref<4x8xf32, #tpu.memory_space<smem>>
    %41 = vector.broadcast %40 : f32 to vector<6x256xf32>
    %42 = arith.mulf %8, %41 : vector<6x256xf32>
    %43 = arith.addf %39, %42 : vector<6x256xf32>
    %c3_26 = arith.constant 3 : index
    %c1_27 = arith.constant 1 : index
    %44 = memref.load %arg3[%c3_26, %c1_27] : memref<4x8xf32, #tpu.memory_space<smem>>
    %45 = vector.broadcast %44 : f32 to vector<6x256xf32>
    %46 = arith.mulf %10, %45 : vector<6x256xf32>
    %47 = arith.addf %43, %46 : vector<6x256xf32>
    %c0_28 = arith.constant 0 : index
    %c1_29 = arith.constant 1 : index
    %48 = memref.load %arg4[%c0_28, %c1_29] : memref<1x8xf32, #tpu.memory_space<smem>>
    %49 = vector.broadcast %48 : f32 to vector<6x256xf32>
    %50 = arith.addf %47, %49 : vector<6x256xf32>
    %cst_30 = arith.constant 0.000000e+00 : f32
    %51 = vector.broadcast %cst_30 : f32 to vector<6x256xf32>
    %52 = arith.maximumf %50, %51 : vector<6x256xf32>
    %cst_31 = arith.constant dense<0.000000e+00> : vector<6xf32>
    %53 = vector.multi_reduction <add>, %52, %cst_31 [1] : vector<6x256xf32> to vector<6xf32>
    %54 = vector.shape_cast %53 : vector<6xf32> to vector<6x1xf32>
    %c0_32 = arith.constant 0 : index
    %c2_33 = arith.constant 2 : index
    %55 = memref.load %arg3[%c0_32, %c2_33] : memref<4x8xf32, #tpu.memory_space<smem>>
    %56 = vector.broadcast %55 : f32 to vector<6x256xf32>
    %57 = arith.mulf %4, %56 : vector<6x256xf32>
    %c1_34 = arith.constant 1 : index
    %c2_35 = arith.constant 2 : index
    %58 = memref.load %arg3[%c1_34, %c2_35] : memref<4x8xf32, #tpu.memory_space<smem>>
    %59 = vector.broadcast %58 : f32 to vector<6x256xf32>
    %60 = arith.mulf %6, %59 : vector<6x256xf32>
    %61 = arith.addf %57, %60 : vector<6x256xf32>
    %c2_36 = arith.constant 2 : index
    %c2_37 = arith.constant 2 : index
    %62 = memref.load %arg3[%c2_36, %c2_37] : memref<4x8xf32, #tpu.memory_space<smem>>
    %63 = vector.broadcast %62 : f32 to vector<6x256xf32>
    %64 = arith.mulf %8, %63 : vector<6x256xf32>
    %65 = arith.addf %61, %64 : vector<6x256xf32>
    %c3_38 = arith.constant 3 : index
    %c2_39 = arith.constant 2 : index
    %66 = memref.load %arg3[%c3_38, %c2_39] : memref<4x8xf32, #tpu.memory_space<smem>>
    %67 = vector.broadcast %66 : f32 to vector<6x256xf32>
    %68 = arith.mulf %10, %67 : vector<6x256xf32>
    %69 = arith.addf %65, %68 : vector<6x256xf32>
    %c0_40 = arith.constant 0 : index
    %c2_41 = arith.constant 2 : index
    %70 = memref.load %arg4[%c0_40, %c2_41] : memref<1x8xf32, #tpu.memory_space<smem>>
    %71 = vector.broadcast %70 : f32 to vector<6x256xf32>
    %72 = arith.addf %69, %71 : vector<6x256xf32>
    %cst_42 = arith.constant 0.000000e+00 : f32
    %73 = vector.broadcast %cst_42 : f32 to vector<6x256xf32>
    %74 = arith.maximumf %72, %73 : vector<6x256xf32>
    %cst_43 = arith.constant dense<0.000000e+00> : vector<6xf32>
    %75 = vector.multi_reduction <add>, %74, %cst_43 [1] : vector<6x256xf32> to vector<6xf32>
    %76 = vector.shape_cast %75 : vector<6xf32> to vector<6x1xf32>
    %c0_44 = arith.constant 0 : index
    %c3_45 = arith.constant 3 : index
    %77 = memref.load %arg3[%c0_44, %c3_45] : memref<4x8xf32, #tpu.memory_space<smem>>
    %78 = vector.broadcast %77 : f32 to vector<6x256xf32>
    %79 = arith.mulf %4, %78 : vector<6x256xf32>
    %c1_46 = arith.constant 1 : index
    %c3_47 = arith.constant 3 : index
    %80 = memref.load %arg3[%c1_46, %c3_47] : memref<4x8xf32, #tpu.memory_space<smem>>
    %81 = vector.broadcast %80 : f32 to vector<6x256xf32>
    %82 = arith.mulf %6, %81 : vector<6x256xf32>
    %83 = arith.addf %79, %82 : vector<6x256xf32>
    %c2_48 = arith.constant 2 : index
    %c3_49 = arith.constant 3 : index
    %84 = memref.load %arg3[%c2_48, %c3_49] : memref<4x8xf32, #tpu.memory_space<smem>>
    %85 = vector.broadcast %84 : f32 to vector<6x256xf32>
    %86 = arith.mulf %8, %85 : vector<6x256xf32>
    %87 = arith.addf %83, %86 : vector<6x256xf32>
    %c3_50 = arith.constant 3 : index
    %c3_51 = arith.constant 3 : index
    %88 = memref.load %arg3[%c3_50, %c3_51] : memref<4x8xf32, #tpu.memory_space<smem>>
    %89 = vector.broadcast %88 : f32 to vector<6x256xf32>
    %90 = arith.mulf %10, %89 : vector<6x256xf32>
    %91 = arith.addf %87, %90 : vector<6x256xf32>
    %c0_52 = arith.constant 0 : index
    %c3_53 = arith.constant 3 : index
    %92 = memref.load %arg4[%c0_52, %c3_53] : memref<1x8xf32, #tpu.memory_space<smem>>
    %93 = vector.broadcast %92 : f32 to vector<6x256xf32>
    %94 = arith.addf %91, %93 : vector<6x256xf32>
    %cst_54 = arith.constant 0.000000e+00 : f32
    %95 = vector.broadcast %cst_54 : f32 to vector<6x256xf32>
    %96 = arith.maximumf %94, %95 : vector<6x256xf32>
    %cst_55 = arith.constant dense<0.000000e+00> : vector<6xf32>
    %97 = vector.multi_reduction <add>, %96, %cst_55 [1] : vector<6x256xf32> to vector<6xf32>
    %98 = vector.shape_cast %97 : vector<6xf32> to vector<6x1xf32>
    %c0_56 = arith.constant 0 : index
    %c4 = arith.constant 4 : index
    %99 = memref.load %arg3[%c0_56, %c4] : memref<4x8xf32, #tpu.memory_space<smem>>
    %100 = vector.broadcast %99 : f32 to vector<6x256xf32>
    %101 = arith.mulf %4, %100 : vector<6x256xf32>
    %c1_57 = arith.constant 1 : index
    %c4_58 = arith.constant 4 : index
    %102 = memref.load %arg3[%c1_57, %c4_58] : memref<4x8xf32, #tpu.memory_space<smem>>
    %103 = vector.broadcast %102 : f32 to vector<6x256xf32>
    %104 = arith.mulf %6, %103 : vector<6x256xf32>
    %105 = arith.addf %101, %104 : vector<6x256xf32>
    %c2_59 = arith.constant 2 : index
    %c4_60 = arith.constant 4 : index
    %106 = memref.load %arg3[%c2_59, %c4_60] : memref<4x8xf32, #tpu.memory_space<smem>>
    %107 = vector.broadcast %106 : f32 to vector<6x256xf32>
    %108 = arith.mulf %8, %107 : vector<6x256xf32>
    %109 = arith.addf %105, %108 : vector<6x256xf32>
    %c3_61 = arith.constant 3 : index
    %c4_62 = arith.constant 4 : index
    %110 = memref.load %arg3[%c3_61, %c4_62] : memref<4x8xf32, #tpu.memory_space<smem>>
    %111 = vector.broadcast %110 : f32 to vector<6x256xf32>
    %112 = arith.mulf %10, %111 : vector<6x256xf32>
    %113 = arith.addf %109, %112 : vector<6x256xf32>
    %c0_63 = arith.constant 0 : index
    %c4_64 = arith.constant 4 : index
    %114 = memref.load %arg4[%c0_63, %c4_64] : memref<1x8xf32, #tpu.memory_space<smem>>
    %115 = vector.broadcast %114 : f32 to vector<6x256xf32>
    %116 = arith.addf %113, %115 : vector<6x256xf32>
    %cst_65 = arith.constant 0.000000e+00 : f32
    %117 = vector.broadcast %cst_65 : f32 to vector<6x256xf32>
    %118 = arith.maximumf %116, %117 : vector<6x256xf32>
    %cst_66 = arith.constant dense<0.000000e+00> : vector<6xf32>
    %119 = vector.multi_reduction <add>, %118, %cst_66 [1] : vector<6x256xf32> to vector<6xf32>
    %120 = vector.shape_cast %119 : vector<6xf32> to vector<6x1xf32>
    %c0_67 = arith.constant 0 : index
    %c5 = arith.constant 5 : index
    %121 = memref.load %arg3[%c0_67, %c5] : memref<4x8xf32, #tpu.memory_space<smem>>
    %122 = vector.broadcast %121 : f32 to vector<6x256xf32>
    %123 = arith.mulf %4, %122 : vector<6x256xf32>
    %c1_68 = arith.constant 1 : index
    %c5_69 = arith.constant 5 : index
    %124 = memref.load %arg3[%c1_68, %c5_69] : memref<4x8xf32, #tpu.memory_space<smem>>
    %125 = vector.broadcast %124 : f32 to vector<6x256xf32>
    %126 = arith.mulf %6, %125 : vector<6x256xf32>
    %127 = arith.addf %123, %126 : vector<6x256xf32>
    %c2_70 = arith.constant 2 : index
    %c5_71 = arith.constant 5 : index
    %128 = memref.load %arg3[%c2_70, %c5_71] : memref<4x8xf32, #tpu.memory_space<smem>>
    %129 = vector.broadcast %128 : f32 to vector<6x256xf32>
    %130 = arith.mulf %8, %129 : vector<6x256xf32>
    %131 = arith.addf %127, %130 : vector<6x256xf32>
    %c3_72 = arith.constant 3 : index
    %c5_73 = arith.constant 5 : index
    %132 = memref.load %arg3[%c3_72, %c5_73] : memref<4x8xf32, #tpu.memory_space<smem>>
    %133 = vector.broadcast %132 : f32 to vector<6x256xf32>
    %134 = arith.mulf %10, %133 : vector<6x256xf32>
    %135 = arith.addf %131, %134 : vector<6x256xf32>
    %c0_74 = arith.constant 0 : index
    %c5_75 = arith.constant 5 : index
    %136 = memref.load %arg4[%c0_74, %c5_75] : memref<1x8xf32, #tpu.memory_space<smem>>
    %137 = vector.broadcast %136 : f32 to vector<6x256xf32>
    %138 = arith.addf %135, %137 : vector<6x256xf32>
    %cst_76 = arith.constant 0.000000e+00 : f32
    %139 = vector.broadcast %cst_76 : f32 to vector<6x256xf32>
    %140 = arith.maximumf %138, %139 : vector<6x256xf32>
    %cst_77 = arith.constant dense<0.000000e+00> : vector<6xf32>
    %141 = vector.multi_reduction <add>, %140, %cst_77 [1] : vector<6x256xf32> to vector<6xf32>
    %142 = vector.shape_cast %141 : vector<6xf32> to vector<6x1xf32>
    %c0_78 = arith.constant 0 : index
    %c6 = arith.constant 6 : index
    %143 = memref.load %arg3[%c0_78, %c6] : memref<4x8xf32, #tpu.memory_space<smem>>
    %144 = vector.broadcast %143 : f32 to vector<6x256xf32>
    %145 = arith.mulf %4, %144 : vector<6x256xf32>
    %c1_79 = arith.constant 1 : index
    %c6_80 = arith.constant 6 : index
    %146 = memref.load %arg3[%c1_79, %c6_80] : memref<4x8xf32, #tpu.memory_space<smem>>
    %147 = vector.broadcast %146 : f32 to vector<6x256xf32>
    %148 = arith.mulf %6, %147 : vector<6x256xf32>
    %149 = arith.addf %145, %148 : vector<6x256xf32>
    %c2_81 = arith.constant 2 : index
    %c6_82 = arith.constant 6 : index
    %150 = memref.load %arg3[%c2_81, %c6_82] : memref<4x8xf32, #tpu.memory_space<smem>>
    %151 = vector.broadcast %150 : f32 to vector<6x256xf32>
    %152 = arith.mulf %8, %151 : vector<6x256xf32>
    %153 = arith.addf %149, %152 : vector<6x256xf32>
    %c3_83 = arith.constant 3 : index
    %c6_84 = arith.constant 6 : index
    %154 = memref.load %arg3[%c3_83, %c6_84] : memref<4x8xf32, #tpu.memory_space<smem>>
    %155 = vector.broadcast %154 : f32 to vector<6x256xf32>
    %156 = arith.mulf %10, %155 : vector<6x256xf32>
    %157 = arith.addf %153, %156 : vector<6x256xf32>
    %c0_85 = arith.constant 0 : index
    %c6_86 = arith.constant 6 : index
    %158 = memref.load %arg4[%c0_85, %c6_86] : memref<1x8xf32, #tpu.memory_space<smem>>
    %159 = vector.broadcast %158 : f32 to vector<6x256xf32>
    %160 = arith.addf %157, %159 : vector<6x256xf32>
    %cst_87 = arith.constant 0.000000e+00 : f32
    %161 = vector.broadcast %cst_87 : f32 to vector<6x256xf32>
    %162 = arith.maximumf %160, %161 : vector<6x256xf32>
    %cst_88 = arith.constant dense<0.000000e+00> : vector<6xf32>
    %163 = vector.multi_reduction <add>, %162, %cst_88 [1] : vector<6x256xf32> to vector<6xf32>
    %164 = vector.shape_cast %163 : vector<6xf32> to vector<6x1xf32>
    %c0_89 = arith.constant 0 : index
    %c7 = arith.constant 7 : index
    %165 = memref.load %arg3[%c0_89, %c7] : memref<4x8xf32, #tpu.memory_space<smem>>
    %166 = vector.broadcast %165 : f32 to vector<6x256xf32>
    %167 = arith.mulf %4, %166 : vector<6x256xf32>
    %c1_90 = arith.constant 1 : index
    %c7_91 = arith.constant 7 : index
    %168 = memref.load %arg3[%c1_90, %c7_91] : memref<4x8xf32, #tpu.memory_space<smem>>
    %169 = vector.broadcast %168 : f32 to vector<6x256xf32>
    %170 = arith.mulf %6, %169 : vector<6x256xf32>
    %171 = arith.addf %167, %170 : vector<6x256xf32>
    %c2_92 = arith.constant 2 : index
    %c7_93 = arith.constant 7 : index
    %172 = memref.load %arg3[%c2_92, %c7_93] : memref<4x8xf32, #tpu.memory_space<smem>>
    %173 = vector.broadcast %172 : f32 to vector<6x256xf32>
    %174 = arith.mulf %8, %173 : vector<6x256xf32>
    %175 = arith.addf %171, %174 : vector<6x256xf32>
    %c3_94 = arith.constant 3 : index
    %c7_95 = arith.constant 7 : index
    %176 = memref.load %arg3[%c3_94, %c7_95] : memref<4x8xf32, #tpu.memory_space<smem>>
    %177 = vector.broadcast %176 : f32 to vector<6x256xf32>
    %178 = arith.mulf %10, %177 : vector<6x256xf32>
    %179 = arith.addf %175, %178 : vector<6x256xf32>
    %c0_96 = arith.constant 0 : index
    %c7_97 = arith.constant 7 : index
    %180 = memref.load %arg4[%c0_96, %c7_97] : memref<1x8xf32, #tpu.memory_space<smem>>
    %181 = vector.broadcast %180 : f32 to vector<6x256xf32>
    %182 = arith.addf %179, %181 : vector<6x256xf32>
    %cst_98 = arith.constant 0.000000e+00 : f32
    %183 = vector.broadcast %cst_98 : f32 to vector<6x256xf32>
    %184 = arith.maximumf %182, %183 : vector<6x256xf32>
    %cst_99 = arith.constant dense<0.000000e+00> : vector<6xf32>
    %185 = vector.multi_reduction <add>, %184, %cst_99 [1] : vector<6x256xf32> to vector<6xf32>
    %186 = vector.shape_cast %185 : vector<6xf32> to vector<6x1xf32>
    %c0_100 = arith.constant 0 : index
    %c0_101 = arith.constant 0 : index
    %187 = vector.load %arg14[%c0_100, %c0_101] : memref<6x8xf32, #tpu.memory_space<vmem>>, vector<6x8xf32>
    %188 = tpu.concatenate %32, %54, %76, %98, %120, %142, %164, %186 in 1 : vector<6x1xf32>, vector<6x1xf32>, vector<6x1xf32>, vector<6x1xf32>, vector<6x1xf32>, vector<6x1xf32>, vector<6x1xf32>, vector<6x1xf32> -> vector<6x8xf32>
    %189 = arith.addf %187, %188 : vector<6x8xf32>
    %c0_102 = arith.constant 0 : index
    %c0_103 = arith.constant 0 : index
    %190 = vector.load %arg14[%c0_102, %c0_103] : memref<6x8xf32, #tpu.memory_space<vmem>>, vector<6x8xf32>
    tpu.vector_store %arg14[%c0_102, %c0_103], %189 {strides = array<i32>} : memref<6x8xf32, #tpu.memory_space<vmem>>, vector<6x8xf32>,
    %c0_i32_104 = arith.constant 0 : i32
    %191 = arith.cmpi eq, %arg1, %c0_i32_104 : i32
    %192 = arith.extui %191 : i1 to i32
    %c0_i32_105 = arith.constant 0 : i32
    %193 = arith.cmpi ne, %192, %c0_i32_105 : i32
    scf.if %193 {
      %c0_106 = arith.constant 0 : index
      %c0_107 = arith.constant 0 : index
      %194 = vector.load %arg14[%c0_106, %c0_107] : memref<6x8xf32, #tpu.memory_space<vmem>>, vector<6x8xf32>
      %cst_108 = arith.constant 3.906250e-03 : f32
      %195 = vector.broadcast %cst_108 : f32 to vector<6x8xf32>
      %196 = arith.mulf %194, %195 : vector<6x8xf32>
      %c0_109 = arith.constant 0 : index
      %c0_110 = arith.constant 0 : index
      %197 = vector.load %arg5[%c0_109, %c0_110] : memref<8x64xf32, #tpu.memory_space<vmem>>, vector<8x64xf32>
      %cst_111 = arith.constant dense<0.000000e+00> : vector<6x64xf32>
      %198 = tpu.matmul %196, %197, %cst_111 {dimension_numbers = #tpu.dot_dimension_numbers<[1], [0], [0], [1], [0, 0, 1, 1], [], []>} : vector<6x8xf32>, vector<8x64xf32>, vector<6x64xf32> -> vector<6x64xf32>
      %c0_112 = arith.constant 0 : index
      %c0_113 = arith.constant 0 : index
      %199 = vector.load %arg6[%c0_112, %c0_113] : memref<1x64xf32, #tpu.memory_space<vmem>>, vector<1x64xf32>
      %200 = vector.broadcast %199 : vector<1x64xf32> to vector<6x64xf32>
      %201 = arith.addf %198, %200 : vector<6x64xf32>
      %c0_114 = arith.constant 0 : index
      %c0_115 = arith.constant 0 : index
      %202 = vector.load %arg7[%c0_114, %c0_115] : memref<64x64xf32, #tpu.memory_space<vmem>>, vector<64x64xf32>
      %cst_116 = arith.constant dense<0.000000e+00> : vector<6x64xf32>
      %203 = tpu.matmul %201, %202, %cst_116 {dimension_numbers = #tpu.dot_dimension_numbers<[1], [0], [0], [1], [0, 0, 1, 1], [], []>} : vector<6x64xf32>, vector<64x64xf32>, vector<6x64xf32> -> vector<6x64xf32>
      %c0_117 = arith.constant 0 : index
      %c0_118 = arith.constant 0 : index
      %204 = vector.load %arg8[%c0_117, %c0_118] : memref<1x64xf32, #tpu.memory_space<vmem>>, vector<1x64xf32>
      %205 = vector.broadcast %204 : vector<1x64xf32> to vector<6x64xf32>
      %206 = arith.addf %203, %205 : vector<6x64xf32>
      %cst_119 = arith.constant 2.000000e-02 : f32
      %207 = vector.broadcast %cst_119 : f32 to vector<6x64xf32>
      %208 = arith.mulf %207, %206 : vector<6x64xf32>
      %209 = arith.maximumf %206, %208 : vector<6x64xf32>
      %c0_120 = arith.constant 0 : index
      %c0_121 = arith.constant 0 : index
      %210 = vector.load %arg9[%c0_120, %c0_121] : memref<64x32xf32, #tpu.memory_space<vmem>>, vector<64x32xf32>
      %cst_122 = arith.constant dense<0.000000e+00> : vector<6x32xf32>
      %211 = tpu.matmul %209, %210, %cst_122 {dimension_numbers = #tpu.dot_dimension_numbers<[1], [0], [0], [1], [0, 0, 1, 1], [], []>} : vector<6x64xf32>, vector<64x32xf32>, vector<6x32xf32> -> vector<6x32xf32>
      %c0_123 = arith.constant 0 : index
      %c0_124 = arith.constant 0 : index
      %212 = vector.load %arg10[%c0_123, %c0_124] : memref<1x32xf32, #tpu.memory_space<vmem>>, vector<1x32xf32>
      %213 = vector.broadcast %212 : vector<1x32xf32> to vector<6x32xf32>
      %214 = arith.addf %211, %213 : vector<6x32xf32>
      %cst_125 = arith.constant 2.000000e-02 : f32
      %215 = vector.broadcast %cst_125 : f32 to vector<6x32xf32>
      %216 = arith.mulf %215, %214 : vector<6x32xf32>
      %217 = arith.maximumf %214, %216 : vector<6x32xf32>
      %c0_126 = arith.constant 0 : index
      %c0_127 = arith.constant 0 : index
      %218 = vector.load %arg11[%c0_126, %c0_127] : memref<32x32xf32, #tpu.memory_space<vmem>>, vector<32x32xf32>
      %cst_128 = arith.constant dense<0.000000e+00> : vector<6x32xf32>
      %219 = tpu.matmul %217, %218, %cst_128 {dimension_numbers = #tpu.dot_dimension_numbers<[1], [0], [0], [1], [0, 0, 1, 1], [], []>} : vector<6x32xf32>, vector<32x32xf32>, vector<6x32xf32> -> vector<6x32xf32>
      %c0_129 = arith.constant 0 : index
      %c0_130 = arith.constant 0 : index
      %220 = vector.load %arg12[%c0_129, %c0_130] : memref<1x32xf32, #tpu.memory_space<vmem>>, vector<1x32xf32>
      %221 = vector.broadcast %220 : vector<1x32xf32> to vector<6x32xf32>
      %222 = arith.addf %219, %221 : vector<6x32xf32>
      %223 = tpu.iota {dimensions = array<i32: 1>} : vector<6x32xi32>
      %c16_i32 = arith.constant 16 : i32
      %224 = vector.broadcast %c16_i32 : i32 to vector<6x32xi32>
      %225 = arith.cmpi slt, %223, %224 : vector<6x32xi32>
      %226 = math.exp %222 : vector<6x32xf32>
      %227 = arith.select %225, %222, %226 : vector<6x32xi1>, vector<6x32xf32>
      %c0_131 = arith.constant 0 : index
      %c0_132 = arith.constant 0 : index
      %228 = vector.load %arg13[%c0_131, %c0_132] : memref<6x32xf32, #tpu.memory_space<vmem>>, vector<6x32xf32>
      tpu.vector_store %arg13[%c0_131, %c0_132], %227 {strides = array<i32>} : memref<6x32xf32, #tpu.memory_space<vmem>>, vector<6x32xf32>,
    } else {
    }
    return
  }
  func.func @transform_0(%arg0: i32, %arg1: i32) -> (i32, i32, i32) {
    %c0_i32 = arith.constant 0 : i32
    %c0_i32_0 = arith.constant 0 : i32
    return %arg0, %c0_i32, %arg1 : i32, i32, i32
  }
  func.func @transform_1(%arg0: i32, %arg1: i32) -> (i32, i32) {
    %c0_i32 = arith.constant 0 : i32
    %c0_i32_0 = arith.constant 0 : i32
    %c0_i32_1 = arith.constant 0 : i32
    return %c0_i32, %c0_i32_0 : i32, i32
  }
  func.func @transform_2(%arg0: i32, %arg1: i32) -> (i32, i32) {
    %c0_i32 = arith.constant 0 : i32
    %c0_i32_0 = arith.constant 0 : i32
    %c0_i32_1 = arith.constant 0 : i32
    return %c0_i32, %c0_i32_0 : i32, i32
  }
  func.func @transform_3(%arg0: i32, %arg1: i32) -> (i32, i32) {
    %c0_i32 = arith.constant 0 : i32
    %c0_i32_0 = arith.constant 0 : i32
    %c0_i32_1 = arith.constant 0 : i32
    return %c0_i32, %c0_i32_0 : i32, i32
  }
  func.func @transform_4(%arg0: i32, %arg1: i32) -> (i32, i32) {
    %c0_i32 = arith.constant 0 : i32
    %c0_i32_0 = arith.constant 0 : i32
    %c0_i32_1 = arith.constant 0 : i32
    return %c0_i32, %c0_i32_0 : i32, i32
  }
  func.func @transform_5(%arg0: i32, %arg1: i32) -> (i32, i32) {
    %c0_i32 = arith.constant 0 : i32
    %c0_i32_0 = arith.constant 0 : i32
    %c0_i32_1 = arith.constant 0 : i32
    return %c0_i32, %c0_i32_0 : i32, i32
  }
  func.func @transform_6(%arg0: i32, %arg1: i32) -> (i32, i32) {
    %c0_i32 = arith.constant 0 : i32
    %c0_i32_0 = arith.constant 0 : i32
    %c0_i32_1 = arith.constant 0 : i32
    return %c0_i32, %c0_i32_0 : i32, i32
  }
  func.func @transform_7(%arg0: i32, %arg1: i32) -> (i32, i32) {
    %c0_i32 = arith.constant 0 : i32
    %c0_i32_0 = arith.constant 0 : i32
    %c0_i32_1 = arith.constant 0 : i32
    return %c0_i32, %c0_i32_0 : i32, i32
  }
  func.func @transform_8(%arg0: i32, %arg1: i32) -> (i32, i32) {
    %c0_i32 = arith.constant 0 : i32
    %c0_i32_0 = arith.constant 0 : i32
    %c0_i32_1 = arith.constant 0 : i32
    return %c0_i32, %c0_i32_0 : i32, i32
  }
  func.func @transform_9(%arg0: i32, %arg1: i32) -> (i32, i32) {
    %c0_i32 = arith.constant 0 : i32
    %c0_i32_0 = arith.constant 0 : i32
    %c0_i32_1 = arith.constant 0 : i32
    return %c0_i32, %c0_i32_0 : i32, i32
  }
  func.func @transform_10(%arg0: i32, %arg1: i32) -> (i32, i32) {
    %c0_i32 = arith.constant 0 : i32
    %c0_i32_0 = arith.constant 0 : i32
    %c0_i32_1 = arith.constant 0 : i32
    return %c0_i32, %c0_i32_0 : i32, i32
  }
  func.func @transform_11(%arg0: i32, %arg1: i32) -> (i32, i32) {
    %c0_i32 = arith.constant 0 : i32
    %c0_i32_0 = arith.constant 0 : i32
    return %arg0, %c0_i32 : i32, i32
  }
}

</mosaic_0001>

<bundles_post_ra>
// kernel: tpu_custom_call.1
= control target key start
LH: loop header
LB: loop body
LE: loop exit
PB: predicated region body
PF: predicated region fallthrough
CT: control target
= control target key end

     0   :  { %16 = vsyncpa [#allocation4], 0  ;;  %s1788_s0 = inlined_call_operand.hbm [shape: f32[6,4,256], index: 0, kind: input, shape index: {}]   ;;  %s1789_s1 = inlined_call_operand.vmem [shape: f32[4,8], index: 1, kind: input, shape index: {}]   ;;  %s1790_s2 = inlined_call_operand.hbm [shape: f32[1,8], index: 2, kind: input, shape index: {}]   ;;  %s1791_s3 = inlined_call_operand.hbm [shape: f32[8,64], index: 3, kind: input, shape index: {}]   ;;  %s1792_s4 = inlined_call_operand.hbm [shape: f32[1,64], index: 4, kind: input, shape index: {}]   ;;  %s1793_s5 = inlined_call_operand.vmem [shape: f32[64,64], index: 5, kind: input, shape index: {}]   ;;  %s1794_s6 = inlined_call_operand.vmem [shape: f32[1,64], index: 6, kind: input, shape index: {}]   ;;  %s1795_s7 = inlined_call_operand.vmem [shape: f32[64,32], index: 7, kind: input, shape index: {}]   ;;  %s1796_s8 = inlined_call_operand.vmem [shape: f32[1,32], index: 8, kind: input, shape index: {}]   ;;  %s1797_s9 = inlined_call_operand.vmem [shape: f32[32,32], index: 9, kind: input, shape index: {}]   ;;  %s1798_s10 = inlined_call_operand.vmem [shape: f32[1,32], index: 10, kind: input, shape index: {}]   ;;  %s1799_s11 = inlined_call_operand.hbm [shape: f32[6,32], index: 11, kind: output, shape index: {}]  }
   0x1   :  { %17 = vsyncpa [#allocation7], 0 }
   0x2   :  { %18 = vsyncpa [#allocation6], 0 }
   0x3   :  { %19 = vsyncpa [#allocation11], 0  ;;  %s57_s19 = sshll.u32 %s1791_s3, 4  ;;  %s58_s19 = int_to_ptr.hbm [resolvable:$true] %s57_s19 }
   0x4   :  { %20 = vsyncpa [#allocation5], 0  ;;  %s1279_s20 = smov [#allocation10]   ;;  %s25_s24 = sshll.u32 %s1788_s0, 4  ;;  %s26_s24 = int_to_ptr.hbm [resolvable:$true] %s25_s24 }
   0x5   :  { %s59_s21 = sshll.u32 %s1279_s20, 4  ;;  %s1280_s25 = smov [#allocation3]   ;;  %s60_s21 = int_to_ptr.vmem [resolvable:$true] %s59_s21 }
   0x6   :  { %62 = dma.hbm_to_vmem [thread:$0]  %s58_s19, 128, %s60_s21, [#allocation11]  }
   0x7   :  { %s27_s26 = sshll.u32 %s1280_s25, 4  ;;  %s1281_s27 = smov 128   ;;  %s28_s26 = int_to_ptr.vmem [resolvable:$true] %s27_s26 }
   0x8   :  { %s1282_s28 = smov 8   ;;  %s39_s3 = sshll.u32 %s1789_s1, 4  ;;  %s40_s3 = int_to_ptr.vmem [resolvable:$true] %s39_s3 }
   0x9   :  { %33 = dma.hbm_to_vmem [thread:$0]  %s26_s24, 768, %s28_s26, [#allocation4], %s1281_s27, %s1281_s27, %s1282_s28  }
   0xa   :  { %s48_s14 = sshll.u32 %s1790_s2, 4  ;;  %s1283_s15 = smov [#allocation8]   ;;  %s49_s14 = int_to_ptr.hbm [resolvable:$true] %s48_s14 }
   0xb   :  { %42 = dma.vmem_to_smem %s40_s3, 64, %s1283_s15, [#allocation7]  }
   0xc   :  { %s1284_s0 = smov [#allocation9]   ;;  %s68_s18 = sshll.u32 %s1792_s4, 4  ;;  %s69_s18 = int_to_ptr.hbm [resolvable:$true] %s68_s18 }
   0xd   :  { %51 = dma.hbm_to_smem %s49_s14, 16, %s1284_s0, [#allocation6]  }
   0xe   :  { %s1285_s19 = smov [#allocation12]  }
   0xf   :  { %s70_s20 = sshll.u32 %s1285_s19, 4  ;;  %s71_s20 = int_to_ptr.vmem [resolvable:$true] %s70_s20 }
  0x10   :  { %73 = dma.hbm_to_vmem [thread:$0]  %s69_s18, 16, %s71_s20, [#allocation11]  }
  0x11   :  { %1269 = dma.done.wait [#allocation4], 768  }
  0x12   :  { %1270 = vsyncadd [#allocation4], 4294966528 }
  0x13   :  { %1271 = dma.done.wait [#allocation7], 64  }
  0x14   :  { %1272 = vsyncadd [#allocation7], 4294967232 }
  0x15   :  { %1273 = dma.done.wait [#allocation6], 16  }
  0x16   :  { %1274 = vsyncadd [#allocation6], 4294967280 }
  0x17   :  { %1275 = dma.done.wait [#allocation11], 144  }
  0x18   :  { %1276 = vsyncadd [#allocation11], 4294967152 }
  0x19   :  { %106 = sfence }
  0x1a   :  { %s160_s1 = sld [smem:[#allocation8]]  ;;  %v1363_v0 = vld [vmem:[#allocation3] ss:$4 sm:$0x3]  ;;  %vm245_vm0 = vcmask 1045504   ;;  %vm111_vm1 = vcmask 62464  }
  0x1b   :  { %s1068_s2 = sld [smem:[#allocation8 + $0x80]]  ;;  %v1365_v1 = vld [vmem:[#allocation3 + $0x8] ss:$4 sm:$0x3]  ;;  %vm882_vm2 = vcmask 7168   ;;  %vm884_vm3 = vcmask 15360  }
  0x1c   :  { %v1367_v2 = vld [vmem:[#allocation3 + $0x10] ss:$4 sm:$0x3]  ;;  %v1369_v3 = vld [vmem:[#allocation3 + $0x18] ss:$4 sm:$0x3] }
  0x1d   :  { %s1069_s4 = sld [smem:[#allocation8 + $0x100]]  ;;  %v1371_v4 = vld [vmem:[#allocation3 + $0x20] ss:$4 sm:$0x3]  ;;  %vm886_vm4 = vcmask 23552   ;;  %vm888_vm5 = vcmask 31744  }
  0x1e   :  { %v1373_v5 = vld [vmem:[#allocation3 + $0x28] ss:$4 sm:$0x3]  ;;  %v1375_v6 = vld [vmem:[#allocation3 + $0x1] ss:$4 sm:$0x3] }
  0x1f   :  { %v1377_v7 = vld [vmem:[#allocation3 + $0x9] ss:$4 sm:$0x3]  ;;  %v1379_v8 = vld [vmem:[#allocation3 + $0x11] ss:$4 sm:$0x3] }
  0x20   :  { %v1381_v9 = vld [vmem:[#allocation3 + $0x19] ss:$4 sm:$0x3]  ;;  %v1383_v10 = vld [vmem:[#allocation3 + $0x21] ss:$4 sm:$0x3]  ;;  %v161_v12 = vstv %s160_s1 }
  0x21   :  { %s1385_s21 = sld [smem:[#allocation8 + $0x180]]  ;;  %v1387_v11 = vld [vmem:[#allocation3 + $0x29] ss:$4 sm:$0x3]  ;;  %v162_v15 = vmul.f32 %v161_v12, %v1363_v0  ;;  %v163_v16 = vmul.f32 %v161_v12, %v1365_v1  ;;  %v164_v17 = vmul.f32 %v161_v12, %v1367_v2  ;;  %v165_v18 = vmul.f32 %v161_v12, %v1369_v3 }
  0x22   :  { %s1389_s22 = sld [smem:[#allocation9]]  ;;  %v1391_v13 = vld [vmem:[#allocation3 + $0x2] ss:$4 sm:$0x3]  ;;  %v166_v20 = vmul.f32 %v161_v12, %v1371_v4  ;;  %v167_v21 = vmul.f32 %v161_v12, %v1373_v5  ;;  %v169_v22 = vstv %s1068_s2  ;;  %vm890_vm6 = vcmask 39936  }
  0x23   :  { %v1393_v14 = vld [vmem:[#allocation3 + $0xa] ss:$4 sm:$0x3]  ;;  %v1399_v19 = vld [vmem:[#allocation3 + $0x12] ss:$4 sm:$0x3]  ;;  %v183_v23 = vstv %s1069_s4  ;;  %v170_v25 = vmul.f32 %v169_v22, %v1375_v6  ;;  %v171_v26 = vmul.f32 %v169_v22, %v1377_v7  ;;  %v172_v27 = vmul.f32 %v169_v22, %v1379_v8 }
  0x24   :  { %s1403_s23 = sld [smem:[#allocation8 + $0x1]]  ;;  %v1405_v24 = vld [vmem:[#allocation3 + $0x1a] ss:$4 sm:$0x3]  ;;  %v173_v28 = vmul.f32 %v169_v22, %v1381_v9  ;;  %v174_v31 = vmul.f32 %v169_v22, %v1383_v10  ;;  %v175_v32 = vmul.f32 %v169_v22, %v1387_v11  ;;  %v184_v33 = vmul.f32 %v183_v23, %v1391_v13 }
  0x25   :  { %s1411_s24 = sld [smem:[#allocation8 + $0x81]]  ;;  %v1413_v29 = vld [vmem:[#allocation3 + $0x22] ss:$4 sm:$0x3]  ;;  %v185_v34 = vmul.f32 %v183_v23, %v1393_v14  ;;  %v176_v37 = vadd.f32 %v170_v25, %v162_v15  ;;  %v177_v38 = vadd.f32 %v171_v26, %v163_v16  ;;  %v178_v39 = vadd.f32 %v172_v27, %v164_v17 }
  0x26   :  { %v1415_v30 = vld [vmem:[#allocation3 + $0x2a] ss:$4 sm:$0x3]  ;;  %v1421_v35 = vld [vmem:[#allocation3 + $0x3] ss:$4 sm:$0x3]  ;;  %v179_v40 = vadd.f32 %v173_v28, %v165_v18  ;;  %v180_v43 = vadd.f32 %v174_v31, %v166_v20  ;;  %v181_v44 = vadd.f32 %v175_v32, %v167_v21  ;;  %v186_v45 = vmul.f32 %v183_v23, %v1399_v19 }
  0x27   :  { %v1423_v36 = vld [vmem:[#allocation3 + $0xb] ss:$4 sm:$0x3]  ;;  %v1425_v41 = vld [vmem:[#allocation3 + $0x13] ss:$4 sm:$0x3]  ;;  %v187_v46 = vmul.f32 %v183_v23, %v1405_v24  ;;  %v188_v49 = vmul.f32 %v183_v23, %v1413_v29  ;;  %v189_v50 = vmul.f32 %v183_v23, %v1415_v30  ;;  %v190_v51 = vadd.f32 %v184_v33, %v176_v37 }
  0x28   :  { %v1427_v42 = vld [vmem:[#allocation3 + $0x1b] ss:$4 sm:$0x3]  ;;  %v1431_v47 = vld [vmem:[#allocation3 + $0x23] ss:$4 sm:$0x3]  ;;  %v191_v52 = vadd.f32 %v185_v34, %v177_v38  ;;  %v192_v53 = vadd.f32 %v186_v45, %v178_v39  ;;  %v197_v55 = vstv %s1385_s21  ;;  %v211_v56 = vstv %s1389_s22 }
  0x29   :  { %v1433_v48 = vld [vmem:[#allocation3 + $0x2b] ss:$4 sm:$0x3]  ;;  %v193_v54 = vadd.f32 %v187_v46, %v179_v40  ;;  %v194_v57 = vadd.f32 %v188_v49, %v180_v43  ;;  %v195_v58 = vadd.f32 %v189_v50, %v181_v44  ;;  %v198_v59 = vmul.f32 %v197_v55, %v1421_v35  ;;  %s1445_s25 = sld [smem:[#allocation8 + $0x101]] }
  0x2a   :  { %v199_v60 = vmul.f32 %v197_v55, %v1423_v36  ;;  %v200_v61 = vmul.f32 %v197_v55, %v1425_v41  ;;  %v201_v62 = vmul.f32 %v197_v55, %v1427_v42  ;;  %v202_v63 = vmul.f32 %v197_v55, %v1431_v47  ;;  %s1449_s26 = sld [smem:[#allocation8 + $0x181]] }
  0x2b   :  { %v203_v12 = vmul.f32 %v197_v55, %v1433_v48  ;;  %v204_v15 = vadd.f32 %v198_v59, %v190_v51  ;;  %v252_v17 = vstv %s1403_s23  ;;  %v260_v18 = vstv %s1411_s24  ;;  %s1459_s27 = sld [smem:[#allocation9 + $0x1]] }
  0x2c   :  { %v205_v16 = vadd.f32 %v199_v60, %v191_v52  ;;  %v206_v20 = vadd.f32 %v200_v61, %v192_v53  ;;  %v207_v21 = vadd.f32 %v201_v62, %v193_v54  ;;  %v208_v22 = vadd.f32 %v202_v63, %v194_v57  ;;  %s1465_s28 = sld [smem:[#allocation8 + $0x2]] }
  0x2d   :  { %v209_v23 = vadd.f32 %v203_v12, %v195_v58  ;;  %v212_v25 = vadd.f32 %v211_v56, %v204_v15  ;;  %v253_v27 = vmul.f32 %v252_v17, %v1363_v0  ;;  %v254_v28 = vmul.f32 %v252_v17, %v1365_v1  ;;  %s1479_s29 = sld [smem:[#allocation8 + $0x82]] }
  0x2e   :  { %v213_v26 = vadd.f32 %v211_v56, %v205_v16  ;;  %v214_v31 = vadd.f32 %v211_v56, %v206_v20  ;;  %v215_v32 = vadd.f32 %v211_v56, %v207_v21  ;;  %v216_v33 = vadd.f32 %v211_v56, %v208_v22  ;;  %s1483_s30 = sld [smem:[#allocation8 + $0x102]] }
  0x2f   :  { %v217_v34 = vadd.f32 %v211_v56, %v209_v23  ;;  %v218_v37 = vmax.f32 %v212_v25, 0.0  ;;  %v255_v39 = vmul.f32 %v252_v17, %v1367_v2  ;;  %v256_v40 = vmul.f32 %v252_v17, %v1369_v3  ;;  %s1489_s3 = sld [smem:[#allocation8 + $0x182]] }
  0x30   :  { %v219_v38 = vmax.f32 %v213_v26, 0.0  ;;  %v220_v43 = vmax.f32 %v214_v31, 0.0  ;;  %v221_v44 = vmax.f32 %v215_v32, 0.0  ;;  %v222_v45 = vmax.f32 %v216_v33, 0.0  ;;  %s1493_s12 = sld [smem:[#allocation9 + $0x2]] }
  0x31   :  { %v223_v46 = vmax.f32 %v217_v34, 0.0  ;;  %230 = vst [vmem:[#allocation1] ss:$9 sm:$0xff] %v218_v37  ;;  %v257_v49 = vmul.f32 %v252_v17, %v1371_v4  ;;  %v258_v50 = vmul.f32 %v252_v17, %v1373_v5  ;;  %v261_v51 = vmul.f32 %v260_v18, %v1375_v6  ;;  %s1500_s13 = sld [smem:[#allocation8 + $0x3]] }
  0x32   :  { %v262_v52 = vmul.f32 %v260_v18, %v1377_v7  ;;  %232 = vst [vmem:[#allocation1 + $0x1] ss:$9 sm:$0xff] %v219_v38  ;;  %v263_v53 = vmul.f32 %v260_v18, %v1379_v8  ;;  %v264_v54 = vmul.f32 %v260_v18, %v1381_v9  ;;  %v265_v55 = vmul.f32 %v260_v18, %v1383_v10  ;;  %s1506_s14 = sld [smem:[#allocation8 + $0x83]] }
  0x33   :  { %v266_v56 = vmul.f32 %v260_v18, %v1387_v11  ;;  %234 = vst [vmem:[#allocation1 + $0x2] ss:$9 sm:$0xff] %v220_v43  ;;  %v267_v57 = vadd.f32 %v261_v51, %v253_v27  ;;  %v274_v59 = vstv %s1445_s25  ;;  %v288_v60 = vstv %s1449_s26  ;;  %s1524_s15 = sld [smem:[#allocation8 + $0x103]] }
  0x34   :  { %v268_v58 = vadd.f32 %v262_v52, %v254_v28  ;;  %236 = vst [vmem:[#allocation1 + $0x3] ss:$9 sm:$0xff] %v221_v44  ;;  %v269_v61 = vadd.f32 %v263_v53, %v255_v39  ;;  %v270_v62 = vadd.f32 %v264_v54, %v256_v40  ;;  %v271_v63 = vadd.f32 %v265_v55, %v257_v49  ;;  %s1529_s0 = sld [smem:[#allocation8 + $0x183]] }
  0x35   :  { %v272_v12 = vadd.f32 %v266_v56, %v258_v50  ;;  %238 = vst [vmem:[#allocation1 + $0x4] ss:$9 sm:$0xff] %v222_v45  ;;  %v275_v15 = vmul.f32 %v274_v59, %v1391_v13  ;;  %v276_v16 = vmul.f32 %v274_v59, %v1393_v14  ;;  %v277_v17 = vmul.f32 %v274_v59, %v1399_v19  ;;  %s1542_s16 = sld [smem:[#allocation9 + $0x3]] }
  0x36   :  { %v278_v18 = vmul.f32 %v274_v59, %v1405_v24  ;;  %240 = vst [vmem:[#allocation1 + $0x5] ss:$9 sm:$0xff] %v223_v46  ;;  %v279_v20 = vmul.f32 %v274_v59, %v1413_v29  ;;  %v280_v21 = vmul.f32 %v274_v59, %v1415_v30  ;;  %v289_v22 = vmul.f32 %v288_v60, %v1421_v35  ;;  %s1548_s17 = sld [smem:[#allocation8 + $0x4]] }
  0x37   :  { %v290_v23 = vmul.f32 %v288_v60, %v1423_v36  ;;  %v281_v25 = vadd.f32 %v275_v15, %v267_v57  ;;  %v282_v26 = vadd.f32 %v276_v16, %v268_v58  ;;  %v283_v27 = vadd.f32 %v277_v17, %v269_v61  ;;  %s1560_s18 = sld [smem:[#allocation8 + $0x84]] }
  0x38   :  { %v284_v28 = vadd.f32 %v278_v18, %v270_v62  ;;  %v285_v31 = vadd.f32 %v279_v20, %v271_v63  ;;  %v286_v32 = vadd.f32 %v280_v21, %v272_v12  ;;  %v291_v33 = vmul.f32 %v288_v60, %v1425_v41  ;;  %s1563_s19 = sld [smem:[#allocation8 + $0x104]] }
  0x39   :  { %v292_v34 = vmul.f32 %v288_v60, %v1427_v42  ;;  %v293_v37 = vmul.f32 %v288_v60, %v1431_v47  ;;  %v294_v38 = vmul.f32 %v288_v60, %v1433_v48  ;;  %v295_v39 = vadd.f32 %v289_v22, %v281_v25  ;;  %s1566_s20 = sld [smem:[#allocation8 + $0x184]] }
  0x3a   :  { %v296_v40 = vadd.f32 %v290_v23, %v282_v26  ;;  %v297_v43 = vadd.f32 %v291_v33, %v283_v27  ;;  %v302_v45 = vstv %s1459_s27  ;;  %v342_v46 = vstv %s1465_s28  ;;  %s1571_s1 = sld [smem:[#allocation9 + $0x4]] }
  0x3b   :  { %v298_v44 = vadd.f32 %v292_v34, %v284_v28  ;;  %v299_v49 = vadd.f32 %v293_v37, %v285_v31  ;;  %v300_v50 = vadd.f32 %v294_v38, %v286_v32  ;;  %v303_v51 = vadd.f32 %v302_v45, %v295_v39  ;;  %s1599_s2 = sld [smem:[#allocation8 + $0x5]] }
  0x3c   :  { %v304_v52 = vadd.f32 %v302_v45, %v296_v40  ;;  %v305_v53 = vadd.f32 %v302_v45, %v297_v43  ;;  %v343_v55 = vmul.f32 %v342_v46, %v1363_v0  ;;  %v344_v56 = vmul.f32 %v342_v46, %v1365_v1  ;;  %s1603_s4 = sld [smem:[#allocation8 + $0x85]] }
  0x3d   :  { %v306_v54 = vadd.f32 %v302_v45, %v298_v44  ;;  %v241_v57 = vld [vmem:[#allocation1] sm:$0xff]  ;;  %v242_v58 = vld [vmem:[#allocation1 + $0x9] sm:$0xff]  ;;  %v307_v59 = vadd.f32 %v302_v45, %v299_v49  ;;  %v308_v60 = vadd.f32 %v302_v45, %v300_v50  ;;  %v309_v61 = vmax.f32 %v303_v51, 0.0  ;;  %s1607_s21 = sld [smem:[#allocation8 + $0x105]] }
  0x3e   :  { %v310_v62 = vmax.f32 %v304_v52, 0.0  ;;  %v246_v63 = vsel %vm245_vm0, %v241_v57, 0.0  ;;  %v247_v12 = vsel %vm245_vm0, %v242_v58, 0.0  ;;  %v311_v15 = vmax.f32 %v305_v53, 0.0  ;;  %s1611_s22 = sld [smem:[#allocation8 + $0x185]] }
  0x3f   :  { %v312_v16 = vmax.f32 %v306_v54, 0.0  ;;  %v248_v17 = vadd.f32 %v247_v12, %v246_v63  ;;  %v313_v18 = vmax.f32 %v307_v59, 0.0  ;;  %v314_v20 = vmax.f32 %v308_v60, 0.0  ;;  %321 = vst [vmem:[#allocation1] ss:$9 sm:$0xff] %v309_v61  ;;  %s1629_s23 = sld [smem:[#allocation9 + $0x5]] }
  0x40   :  { %v345_v21 = vmul.f32 %v342_v46, %v1367_v2  ;;  %323 = vst [vmem:[#allocation1 + $0x1] ss:$9 sm:$0xff] %v310_v62  ;;  %v346_v22 = vmul.f32 %v342_v46, %v1369_v3  ;;  %v347_v23 = vmul.f32 %v342_v46, %v1371_v4  ;;  %v348_v25 = vmul.f32 %v342_v46, %v1373_v5  ;;  %s1635_s24 = sld [smem:[#allocation8 + $0x6]] }
  0x41   :  { %v350_v26 = vstv %s1479_s29  ;;  %249 = vadd.xlane.f32.xlu0 %v248_v17  ;;  %325 = vst [vmem:[#allocation1 + $0x2] ss:$9 sm:$0xff] %v311_v15  ;;  %v364_v32 = vstv %s1483_s30  ;;  %v378_v57 = vstv %s1489_s3  ;;  %v392_v58 = vstv %s1493_s12  ;;  %s1649_s25 = sld [smem:[#allocation8 + $0x86]] }
  0x42   :  { %v351_v27 = vmul.f32 %v350_v26, %v1375_v6  ;;  %v352_v28 = vmul.f32 %v350_v26, %v1377_v7  ;;  %v353_v31 = vmul.f32 %v350_v26, %v1379_v8  ;;  %327 = vst [vmem:[#allocation1 + $0x3] ss:$9 sm:$0xff] %v312_v16  ;;  %v354_v33 = vmul.f32 %v350_v26, %v1381_v9  ;;  %s1653_s26 = sld [smem:[#allocation8 + $0x106]] }
  0x43   :  { %v355_v34 = vmul.f32 %v350_v26, %v1383_v10  ;;  %v356_v37 = vmul.f32 %v350_v26, %v1387_v11  ;;  %v365_v38 = vmul.f32 %v364_v32, %v1391_v13  ;;  %329 = vst [vmem:[#allocation1 + $0x4] ss:$9 sm:$0xff] %v313_v18  ;;  %v366_v44 = vmul.f32 %v364_v32, %v1393_v14  ;;  %s1657_s27 = sld [smem:[#allocation8 + $0x186]] }
  0x44   :  { %v357_v39 = vadd.f32 %v351_v27, %v343_v55  ;;  %v358_v40 = vadd.f32 %v352_v28, %v344_v56  ;;  %v359_v43 = vadd.f32 %v353_v31, %v345_v21  ;;  %331 = vst [vmem:[#allocation1 + $0x5] ss:$9 sm:$0xff] %v314_v20  ;;  %v360_v45 = vadd.f32 %v354_v33, %v346_v22  ;;  %s1668_s28 = sld [smem:[#allocation9 + $0x6]] }
  0x45   :  { %v361_v46 = vadd.f32 %v355_v34, %v347_v23  ;;  %v362_v49 = vadd.f32 %v356_v37, %v348_v25  ;;  %v367_v50 = vmul.f32 %v364_v32, %v1399_v19  ;;  %v368_v51 = vmul.f32 %v364_v32, %v1405_v24  ;;  %s1674_s29 = sld [smem:[#allocation8 + $0x7]] }
  0x46   :  { %v369_v52 = vmul.f32 %v364_v32, %v1413_v29  ;;  %v370_v53 = vmul.f32 %v364_v32, %v1415_v30  ;;  %v371_v54 = vadd.f32 %v365_v38, %v357_v39  ;;  %v372_v55 = vadd.f32 %v366_v44, %v358_v40  ;;  %s1688_s30 = sld [smem:[#allocation8 + $0x87]] }
  0x47   :  { %v373_v56 = vadd.f32 %v367_v50, %v359_v43  ;;  %v374_v59 = vadd.f32 %v368_v51, %v360_v45  ;;  %v379_v62 = vmul.f32 %v378_v57, %v1421_v35  ;;  %v380_v63 = vmul.f32 %v378_v57, %v1423_v36  ;;  %s1690_s3 = sld [smem:[#allocation8 + $0x107]] }
  0x48   :  { %v375_v60 = vadd.f32 %v369_v52, %v361_v46  ;;  %v376_v61 = vadd.f32 %v370_v53, %v362_v49  ;;  %v381_v12 = vmul.f32 %v378_v57, %v1425_v41  ;;  %v382_v15 = vmul.f32 %v378_v57, %v1427_v42  ;;  %s1696_s12 = sld [smem:[#allocation8 + $0x187]] }
  0x49   :  { %v383_v16 = vmul.f32 %v378_v57, %v1431_v47  ;;  %v384_v17 = vmul.f32 %v378_v57, %v1433_v48  ;;  %v385_v18 = vadd.f32 %v379_v62, %v371_v54  ;;  %v432_v20 = vstv %s1500_s13  ;;  %s1705_s13 = sld [smem:[#allocation9 + $0x7]] }
  0x4a   :  { %v440_v21 = vstv %s1506_s14  ;;  %v386_v22 = vadd.f32 %v380_v63, %v372_v55  ;;  %v387_v23 = vadd.f32 %v381_v12, %v373_v56  ;;  %v388_v25 = vadd.f32 %v382_v15, %v374_v59 }
  0x4b   :  { %v389_v26 = vadd.f32 %v383_v16, %v375_v60  ;;  %v390_v27 = vadd.f32 %v384_v17, %v376_v61  ;;  %v393_v28 = vadd.f32 %v392_v58, %v385_v18  ;;  %v433_v31 = vmul.f32 %v432_v20, %v1363_v0  ;;  %v1533_v33 = vld [vmem:[#allocation1] sm:$0xff]  ;;  %v1535_v34 = vld [vmem:[#allocation1 + $0x9] sm:$0xff] }
  0x4c   :  { %v434_v32 = vmul.f32 %v432_v20, %v1365_v1  ;;  %v394_v37 = vadd.f32 %v392_v58, %v386_v22  ;;  %v395_v38 = vadd.f32 %v392_v58, %v387_v23  ;;  %v396_v39 = vadd.f32 %v392_v58, %v388_v25 }
  0x4d   :  { %v397_v40 = vadd.f32 %v392_v58, %v389_v26  ;;  %v398_v43 = vadd.f32 %v392_v58, %v390_v27  ;;  %v399_v44 = vmax.f32 %v393_v28, 0.0  ;;  %v435_v45 = vmul.f32 %v432_v20, %v1367_v2 }
  0x4e   :  { %v436_v46 = vmul.f32 %v432_v20, %v1369_v3  ;;  %v400_v49 = vmax.f32 %v394_v37, 0.0  ;;  %v401_v50 = vmax.f32 %v395_v38, 0.0  ;;  %v402_v51 = vmax.f32 %v396_v39, 0.0 }
  0x4f   :  { %v403_v52 = vmax.f32 %v397_v40, 0.0  ;;  %v404_v53 = vmax.f32 %v398_v43, 0.0  ;;  %411 = vst [vmem:[#allocation1] ss:$9 sm:$0xff] %v399_v44  ;;  %v437_v54 = vmul.f32 %v432_v20, %v1371_v4  ;;  %v438_v55 = vmul.f32 %v432_v20, %v1373_v5 }
  0x50   :  { %v441_v56 = vmul.f32 %v440_v21, %v1375_v6  ;;  %413 = vst [vmem:[#allocation1 + $0x1] ss:$9 sm:$0xff] %v400_v49  ;;  %v442_v57 = vmul.f32 %v440_v21, %v1377_v7  ;;  %v443_v58 = vmul.f32 %v440_v21, %v1379_v8  ;;  %v444_v59 = vmul.f32 %v440_v21, %v1381_v9 }
  0x51   :  { %v445_v60 = vmul.f32 %v440_v21, %v1383_v10  ;;  %415 = vst [vmem:[#allocation1 + $0x2] ss:$9 sm:$0xff] %v401_v50  ;;  %v446_v61 = vmul.f32 %v440_v21, %v1387_v11  ;;  %v454_v63 = vstv %s1524_s15  ;;  %v468_v12 = vstv %s1529_s0 }
  0x52   :  { %v447_v62 = vadd.f32 %v441_v56, %v433_v31  ;;  %417 = vst [vmem:[#allocation1 + $0x3] ss:$9 sm:$0xff] %v402_v51  ;;  %v448_v15 = vadd.f32 %v442_v57, %v434_v32  ;;  %v449_v16 = vadd.f32 %v443_v58, %v435_v45  ;;  %v450_v17 = vadd.f32 %v444_v59, %v436_v46 }
  0x53   :  { %v451_v18 = vadd.f32 %v445_v60, %v437_v54  ;;  %419 = vst [vmem:[#allocation1 + $0x4] ss:$9 sm:$0xff] %v403_v52  ;;  %v452_v20 = vadd.f32 %v446_v61, %v438_v55  ;;  %v455_v22 = vmul.f32 %v454_v63, %v1391_v13  ;;  %v456_v23 = vmul.f32 %v454_v63, %v1393_v14 }
  0x54   :  { %v457_v25 = vmul.f32 %v454_v63, %v1399_v19  ;;  %421 = vst [vmem:[#allocation1 + $0x5] ss:$9 sm:$0xff] %v404_v53  ;;  %v458_v26 = vmul.f32 %v454_v63, %v1405_v24  ;;  %v459_v21 = vmul.f32 %v454_v63, %v1413_v29  ;;  %v460_v27 = vmul.f32 %v454_v63, %v1415_v30 }
  0x55   :  { %v469_v28 = vmul.f32 %v468_v12, %v1421_v35  ;;  %v461_v31 = vadd.f32 %v455_v22, %v447_v62  ;;  %v462_v32 = vadd.f32 %v456_v23, %v448_v15  ;;  %v470_v38 = vmul.f32 %v468_v12, %v1423_v36 }
  0x56   :  { %v463_v37 = vadd.f32 %v457_v25, %v449_v16  ;;  %v464_v39 = vadd.f32 %v458_v26, %v450_v17  ;;  %v465_v40 = vadd.f32 %v459_v21, %v451_v18  ;;  %v466_v43 = vadd.f32 %v460_v27, %v452_v20 }
  0x57   :  { %v471_v44 = vmul.f32 %v468_v12, %v1425_v41  ;;  %v472_v45 = vmul.f32 %v468_v12, %v1427_v42  ;;  %v473_v46 = vmul.f32 %v468_v12, %v1431_v47  ;;  %v474_v49 = vmul.f32 %v468_v12, %v1433_v48 }
  0x58   :  { %v475_v50 = vadd.f32 %v469_v28, %v461_v31  ;;  %v476_v51 = vadd.f32 %v470_v38, %v462_v32  ;;  %v482_v53 = vstv %s1542_s16  ;;  %v522_v54 = vstv %s1548_s17 }
  0x59   :  { %v477_v52 = vadd.f32 %v471_v44, %v463_v37  ;;  %v478_v55 = vadd.f32 %v472_v45, %v464_v39  ;;  %v479_v56 = vadd.f32 %v473_v46, %v465_v40  ;;  %v480_v57 = vadd.f32 %v474_v49, %v466_v43 }
  0x5a   :  { %v483_v58 = vadd.f32 %v482_v53, %v475_v50  ;;  %v484_v59 = vadd.f32 %v482_v53, %v476_v51  ;;  %v523_v61 = vmul.f32 %v522_v54, %v1363_v0  ;;  %v524_v62 = vmul.f32 %v522_v54, %v1365_v1 }
  0x5b   :  { %v485_v60 = vadd.f32 %v482_v53, %v477_v52  ;;  %v422_v63 = vld [vmem:[#allocation1] sm:$0xff]  ;;  %v423_v15 = vld [vmem:[#allocation1 + $0x9] sm:$0xff]  ;;  %v486_v12 = vadd.f32 %v482_v53, %v478_v55  ;;  %v487_v16 = vadd.f32 %v482_v53, %v479_v56  ;;  %v488_v17 = vadd.f32 %v482_v53, %v480_v57 }
  0x5c   :  { %v489_v18 = vmax.f32 %v483_v58, 0.0  ;;  %v426_v20 = vsel %vm245_vm0, %v422_v63, 0.0  ;;  %v427_v22 = vsel %vm245_vm0, %v423_v15, 0.0  ;;  %v490_v23 = vmax.f32 %v484_v59, 0.0 }
  0x5d   :  { %v491_v25 = vmax.f32 %v485_v60, 0.0  ;;  %v428_v26 = vadd.f32 %v427_v22, %v426_v20  ;;  %v492_v21 = vmax.f32 %v486_v12, 0.0  ;;  %v493_v27 = vmax.f32 %v487_v16, 0.0 }
  0x5e   :  { %v494_v28 = vmax.f32 %v488_v17, 0.0  ;;  %501 = vst [vmem:[#allocation1] ss:$9 sm:$0xff] %v489_v18  ;;  %v525_v31 = vmul.f32 %v522_v54, %v1367_v2  ;;  %v526_v32 = vmul.f32 %v522_v54, %v1369_v3  ;;  %v527_v37 = vmul.f32 %v522_v54, %v1371_v4 }
  0x5f   :  { %503 = vst [vmem:[#allocation1 + $0x1] ss:$9 sm:$0xff] %v490_v23  ;;  %v528_v38 = vmul.f32 %v522_v54, %v1373_v5  ;;  %429 = vadd.xlane.f32.xlu1 %v428_v26  ;;  %v530_v39 = vstv %s1560_s18  ;;  %v544_v40 = vstv %s1563_s19  ;;  %v558_v43 = vstv %s1566_s20 }
  0x60   :  { %505 = vst [vmem:[#allocation1 + $0x2] ss:$9 sm:$0xff] %v491_v25  ;;  %v572_v44 = vstv %s1571_s1  ;;  %v531_v45 = vmul.f32 %v530_v39, %v1375_v6  ;;  %v532_v46 = vmul.f32 %v530_v39, %v1377_v7  ;;  %v533_v49 = vmul.f32 %v530_v39, %v1379_v8 }
  0x61   :  { %507 = vst [vmem:[#allocation1 + $0x3] ss:$9 sm:$0xff] %v492_v21  ;;  %v534_v50 = vmul.f32 %v530_v39, %v1381_v9  ;;  %v535_v51 = vmul.f32 %v530_v39, %v1383_v10  ;;  %v536_v52 = vmul.f32 %v530_v39, %v1387_v11  ;;  %v545_v53 = vmul.f32 %v544_v40, %v1391_v13 }
  0x62   :  { %509 = vst [vmem:[#allocation1 + $0x4] ss:$9 sm:$0xff] %v493_v27  ;;  %v546_v54 = vmul.f32 %v544_v40, %v1393_v14  ;;  %v537_v55 = vadd.f32 %v531_v45, %v523_v61  ;;  %v538_v56 = vadd.f32 %v532_v46, %v524_v62  ;;  %v539_v57 = vadd.f32 %v533_v49, %v525_v31 }
  0x63   :  { %511 = vst [vmem:[#allocation1 + $0x5] ss:$9 sm:$0xff] %v494_v28  ;;  %v540_v58 = vadd.f32 %v534_v50, %v526_v32  ;;  %v541_v59 = vadd.f32 %v535_v51, %v527_v37  ;;  %v542_v60 = vadd.f32 %v536_v52, %v528_v38  ;;  %v547_v63 = vmul.f32 %v544_v40, %v1399_v19 }
  0x64   :  { %v548_v15 = vmul.f32 %v544_v40, %v1405_v24  ;;  %v549_v12 = vmul.f32 %v544_v40, %v1413_v29  ;;  %v550_v16 = vmul.f32 %v544_v40, %v1415_v30  ;;  %v551_v17 = vadd.f32 %v545_v53, %v537_v55 }
  0x65   :  { %v552_v18 = vadd.f32 %v546_v54, %v538_v56  ;;  %v553_v20 = vadd.f32 %v547_v63, %v539_v57  ;;  %v559_v61 = vmul.f32 %v558_v43, %v1421_v35  ;;  %v560_v62 = vmul.f32 %v558_v43, %v1423_v36 }
  0x66   :  { %v554_v22 = vadd.f32 %v548_v15, %v540_v58  ;;  %v555_v23 = vadd.f32 %v549_v12, %v541_v59  ;;  %v556_v25 = vadd.f32 %v550_v16, %v542_v60  ;;  %v561_v26 = vmul.f32 %v558_v43, %v1425_v41 }
  0x67   :  { %v562_v21 = vmul.f32 %v558_v43, %v1427_v42  ;;  %v563_v27 = vmul.f32 %v558_v43, %v1431_v47  ;;  %v564_v28 = vmul.f32 %v558_v43, %v1433_v48  ;;  %v565_v31 = vadd.f32 %v559_v61, %v551_v17 }
  0x68   :  { %v566_v32 = vadd.f32 %v560_v62, %v552_v18  ;;  %v567_v37 = vadd.f32 %v561_v26, %v553_v20  ;;  %v336_v39 = vsel %vm245_vm0, %v1533_v33, 0.0  ;;  %v337_v40 = vsel %vm245_vm0, %v1535_v34, 0.0 }
  0x69   :  { %v568_v38 = vadd.f32 %v562_v21, %v554_v22  ;;  %v569_v46 = vadd.f32 %v563_v27, %v555_v23  ;;  %v570_v49 = vadd.f32 %v564_v28, %v556_v25  ;;  %v573_v50 = vadd.f32 %v572_v44, %v565_v31 }
  0x6a   :  { %v512_v45 = vld [vmem:[#allocation1] sm:$0xff]  ;;  %v574_v51 = vadd.f32 %v572_v44, %v566_v32  ;;  %v513_v52 = vld [vmem:[#allocation1 + $0x9] sm:$0xff]  ;;  %v575_v43 = vadd.f32 %v572_v44, %v567_v37  ;;  %v338_v54 = vadd.f32 %v337_v40, %v336_v39  ;;  %v612_v63 = vstv %s1599_s2 }
  0x6b   :  { %v576_v53 = vadd.f32 %v572_v44, %v568_v38  ;;  %v516_v55 = vsel %vm245_vm0, %v512_v45, 0.0  ;;  %v577_v56 = vadd.f32 %v572_v44, %v569_v46  ;;  %v578_v57 = vadd.f32 %v572_v44, %v570_v49 }
  0x6c   :  { %v579_v58 = vmax.f32 %v573_v50, 0.0  ;;  %v580_v59 = vmax.f32 %v574_v51, 0.0  ;;  %v581_v33 = vmax.f32 %v575_v43, 0.0  ;;  %339 = vadd.xlane.f32.xlu0 %v338_v54  ;;  %v517_v34 = vsel %vm245_vm0, %v513_v52, 0.0 }
  0x6d   :  { %v582_v60 = vmax.f32 %v576_v53, 0.0  ;;  %v583_v15 = vmax.f32 %v577_v56, 0.0  ;;  %v584_v12 = vmax.f32 %v578_v57, 0.0  ;;  %v518_v16 = vadd.f32 %v517_v34, %v516_v55 }
  0x6e   :  { %591 = vst [vmem:[#allocation1] ss:$9 sm:$0xff] %v579_v58  ;;  %v613_v17 = vmul.f32 %v612_v63, %v1363_v0  ;;  %v614_v44 = vmul.f32 %v612_v63, %v1365_v1  ;;  %v615_v18 = vmul.f32 %v612_v63, %v1367_v2  ;;  %v616_v20 = vmul.f32 %v612_v63, %v1369_v3 }
  0x6f   :  { %593 = vst [vmem:[#allocation1 + $0x1] ss:$9 sm:$0xff] %v580_v59  ;;  %v617_v22 = vmul.f32 %v612_v63, %v1371_v4  ;;  %519 = vadd.xlane.f32.xlu1 %v518_v16  ;;  %v618_v61 = vmul.f32 %v612_v63, %v1373_v5  ;;  %v620_v62 = vstv %s1603_s4  ;;  %v634_v23 = vstv %s1607_s21 }
  0x70   :  { %595 = vst [vmem:[#allocation1 + $0x2] ss:$9 sm:$0xff] %v581_v33  ;;  %v648_v25 = vstv %s1611_s22  ;;  %v621_v26 = vmul.f32 %v620_v62, %v1375_v6  ;;  %v622_v21 = vmul.f32 %v620_v62, %v1377_v7  ;;  %v623_v27 = vmul.f32 %v620_v62, %v1379_v8 }
  0x71   :  { %597 = vst [vmem:[#allocation1 + $0x3] ss:$9 sm:$0xff] %v582_v60  ;;  %v624_v28 = vmul.f32 %v620_v62, %v1381_v9  ;;  %v625_v31 = vmul.f32 %v620_v62, %v1383_v10  ;;  %v626_v32 = vmul.f32 %v620_v62, %v1387_v11  ;;  %v635_v37 = vmul.f32 %v634_v23, %v1391_v13 }
  0x72   :  { %599 = vst [vmem:[#allocation1 + $0x4] ss:$9 sm:$0xff] %v583_v15  ;;  %v636_v38 = vmul.f32 %v634_v23, %v1393_v14  ;;  %v627_v39 = vadd.f32 %v621_v26, %v613_v17  ;;  %v628_v40 = vadd.f32 %v622_v21, %v614_v44  ;;  %v629_v45 = vadd.f32 %v623_v27, %v615_v18 }
  0x73   :  { %601 = vst [vmem:[#allocation1 + $0x5] ss:$9 sm:$0xff] %v584_v12  ;;  %v630_v46 = vadd.f32 %v624_v28, %v616_v20  ;;  %v631_v49 = vadd.f32 %v625_v31, %v617_v22  ;;  %v632_v50 = vadd.f32 %v626_v32, %v618_v61  ;;  %v637_v51 = vmul.f32 %v634_v23, %v1399_v19 }
  0x74   :  { %v638_v52 = vmul.f32 %v634_v23, %v1405_v24  ;;  %v639_v43 = vmul.f32 %v634_v23, %v1413_v29  ;;  %v640_v53 = vmul.f32 %v634_v23, %v1415_v30  ;;  %v641_v54 = vadd.f32 %v635_v37, %v627_v39 }
  0x75   :  { %v642_v55 = vadd.f32 %v636_v38, %v628_v40  ;;  %v643_v56 = vadd.f32 %v637_v51, %v629_v45  ;;  %v649_v58 = vmul.f32 %v648_v25, %v1421_v35  ;;  %v650_v59 = vmul.f32 %v648_v25, %v1423_v36 }
  0x76   :  { %v644_v57 = vadd.f32 %v638_v52, %v630_v46  ;;  %v645_v33 = vadd.f32 %v639_v43, %v631_v49  ;;  %v646_v60 = vadd.f32 %v640_v53, %v632_v50  ;;  %v651_v34 = vmul.f32 %v648_v25, %v1425_v41 }
  0x77   :  { %v652_v63 = vmul.f32 %v648_v25, %v1427_v42  ;;  %v653_v15 = vmul.f32 %v648_v25, %v1431_v47  ;;  %v654_v12 = vmul.f32 %v648_v25, %v1433_v48  ;;  %v655_v16 = vadd.f32 %v649_v58, %v641_v54 }
  0x78   :  { %v656_v17 = vadd.f32 %v650_v59, %v642_v55  ;;  %v657_v44 = vadd.f32 %v651_v34, %v643_v56  ;;  %v662_v20 = vstv %s1629_s23  ;;  %v702_v22 = vstv %s1635_s24 }
  0x79   :  { %v658_v18 = vadd.f32 %v652_v63, %v644_v57  ;;  %v659_v23 = vadd.f32 %v653_v15, %v645_v33  ;;  %v660_v26 = vadd.f32 %v654_v12, %v646_v60  ;;  %v663_v21 = vadd.f32 %v662_v20, %v655_v16 }
  0x7a   :  { %v602_v61 = vld [vmem:[#allocation1] sm:$0xff]  ;;  %v603_v62 = vld [vmem:[#allocation1 + $0x9] sm:$0xff]  ;;  %v664_v27 = vadd.f32 %v662_v20, %v656_v17  ;;  %v665_v31 = vadd.f32 %v662_v20, %v657_v44  ;;  %v703_v50 = vmul.f32 %v702_v22, %v1363_v0  ;;  %v704_v43 = vmul.f32 %v702_v22, %v1365_v1 }
  0x7b   :  { %v606_v28 = vsel %vm245_vm0, %v602_v61, 0.0  ;;  %v607_v25 = vsel %vm245_vm0, %v603_v62, 0.0  ;;  %v666_v32 = vadd.f32 %v662_v20, %v658_v18  ;;  %v667_v38 = vadd.f32 %v662_v20, %v659_v23 }
  0x7c   :  { %v608_v37 = vadd.f32 %v607_v25, %v606_v28  ;;  %v668_v39 = vadd.f32 %v662_v20, %v660_v26  ;;  %v669_v40 = vmax.f32 %v663_v21, 0.0  ;;  %v670_v45 = vmax.f32 %v664_v27, 0.0 }
  0x7d   :  { %v671_v46 = vmax.f32 %v665_v31, 0.0  ;;  %v672_v49 = vmax.f32 %v666_v32, 0.0  ;;  %v673_v51 = vmax.f32 %v667_v38, 0.0  ;;  %v705_v53 = vmul.f32 %v702_v22, %v1367_v2  ;;  %v1125_v32 = vld [vmem:[#allocation3] ss:$4 sm:$0x3] }
  0x7e   :  { %609 = vadd.xlane.f32.xlu2 %v608_v37  ;;  %v674_v52 = vmax.f32 %v668_v39, 0.0  ;;  %681 = vst [vmem:[#allocation1] ss:$9 sm:$0xff] %v669_v40  ;;  %v706_v54 = vmul.f32 %v702_v22, %v1369_v3  ;;  %v707_v55 = vmul.f32 %v702_v22, %v1371_v4  ;;  %v708_v56 = vmul.f32 %v702_v22, %v1373_v5  ;;  %v1126_v37 = vld [vmem:[#allocation3 + $0x8] ss:$4 sm:$0x3] }
  0x7f   :  { %683 = vst [vmem:[#allocation1 + $0x1] ss:$9 sm:$0xff] %v670_v45  ;;  %v710_v57 = vstv %s1649_s25  ;;  %v724_v5 = vstv %s1653_s26  ;;  %v738_v59 = vstv %s1657_s27  ;;  %v752_v61 = vstv %s1668_s28 }
  0x80   :  { %685 = vst [vmem:[#allocation1 + $0x2] ss:$9 sm:$0xff] %v671_v46  ;;  %v711_v0 = vmul.f32 %v710_v57, %v1375_v6  ;;  %v712_v58 = vmul.f32 %v710_v57, %v1377_v7  ;;  %v713_v1 = vmul.f32 %v710_v57, %v1379_v8  ;;  %v714_v2 = vmul.f32 %v710_v57, %v1381_v9 }
  0x81   :  { %687 = vst [vmem:[#allocation1 + $0x3] ss:$9 sm:$0xff] %v672_v49  ;;  %v715_v3 = vmul.f32 %v710_v57, %v1383_v10  ;;  %v716_v4 = vmul.f32 %v710_v57, %v1387_v11  ;;  %v725_v8 = vmul.f32 %v724_v5, %v1391_v13  ;;  %v726_v9 = vmul.f32 %v724_v5, %v1393_v14  ;;  %v1128_v57 = vld [vmem:[#allocation3 + $0x18] ss:$4 sm:$0x3] }
  0x82   :  { %689 = vst [vmem:[#allocation1 + $0x4] ss:$9 sm:$0xff] %v673_v51  ;;  %v717_v33 = vadd.f32 %v711_v0, %v703_v50  ;;  %v718_v60 = vadd.f32 %v712_v58, %v704_v43  ;;  %v719_v34 = vadd.f32 %v713_v1, %v705_v53  ;;  %v720_v6 = vadd.f32 %v714_v2, %v706_v54  ;;  %v1127_v53 = vld [vmem:[#allocation3 + $0x10] ss:$4 sm:$0x3] }
  0x83   :  { %691 = vst [vmem:[#allocation1 + $0x5] ss:$9 sm:$0xff] %v674_v52  ;;  %v721_v7 = vadd.f32 %v715_v3, %v707_v55  ;;  %v722_v63 = vadd.f32 %v716_v4, %v708_v56  ;;  %v727_v15 = vmul.f32 %v724_v5, %v1399_v19  ;;  %v728_v10 = vmul.f32 %v724_v5, %v1405_v24  ;;  %v1129_v58 = vld [vmem:[#allocation3 + $0x20] ss:$4 sm:$0x3] }
  0x84   :  { %v729_v11 = vmul.f32 %v724_v5, %v1413_v29  ;;  %v730_v12 = vmul.f32 %v724_v5, %v1415_v30  ;;  %v731_v16 = vadd.f32 %v725_v8, %v717_v33  ;;  %v732_v17 = vadd.f32 %v726_v9, %v718_v60  ;;  %v1130_v2 = vld [vmem:[#allocation3 + $0x28] ss:$4 sm:$0x3]  ;;  %v1131_v33 = vld [vmem:[#allocation3 + $0x1] ss:$4 sm:$0x3] }
  0x85   :  { %v739_v44 = vmul.f32 %v738_v59, %v1421_v35  ;;  %v740_v18 = vmul.f32 %v738_v59, %v1423_v36  ;;  %v733_v13 = vadd.f32 %v727_v15, %v719_v34  ;;  %v734_v14 = vadd.f32 %v728_v10, %v720_v6  ;;  %v1132_v34 = vld [vmem:[#allocation3 + $0x9] ss:$4 sm:$0x3]  ;;  %v1134_v8 = vld [vmem:[#allocation3 + $0x19] ss:$4 sm:$0x3] }
  0x86   :  { %v735_v20 = vadd.f32 %v729_v11, %v721_v7  ;;  %v736_v19 = vadd.f32 %v730_v12, %v722_v63  ;;  %v741_v24 = vmul.f32 %v738_v59, %v1425_v41  ;;  %v742_v29 = vmul.f32 %v738_v59, %v1427_v42  ;;  %v1133_v7 = vld [vmem:[#allocation3 + $0x11] ss:$4 sm:$0x3]  ;;  %v1135_v15 = vld [vmem:[#allocation3 + $0x21] ss:$4 sm:$0x3] }
  0x87   :  { %v743_v30 = vmul.f32 %v738_v59, %v1431_v47  ;;  %v744_v22 = vmul.f32 %v738_v59, %v1433_v48  ;;  %v745_v35 = vadd.f32 %v739_v44, %v731_v16  ;;  %v746_v36 = vadd.f32 %v740_v18, %v732_v17  ;;  %v1136_v11 = vld [vmem:[#allocation3 + $0x29] ss:$4 sm:$0x3]  ;;  %v1137_v16 = vld [vmem:[#allocation3 + $0x2] ss:$4 sm:$0x3] }
  0x88   :  { %v792_v62 = vstv %s1674_s29  ;;  %v747_v23 = vadd.f32 %v741_v24, %v733_v13  ;;  %v748_v26 = vadd.f32 %v742_v29, %v734_v14  ;;  %v800_v4 = vstv %s1688_s30  ;;  %v1138_v44 = vld [vmem:[#allocation3 + $0xa] ss:$4 sm:$0x3] }
  0x89   :  { %v749_v21 = vadd.f32 %v743_v30, %v735_v20  ;;  %v750_v27 = vadd.f32 %v744_v22, %v736_v19  ;;  %v753_v31 = vadd.f32 %v752_v61, %v745_v35  ;;  %v754_v41 = vadd.f32 %v752_v61, %v746_v36  ;;  %v1139_v30 = vld [vmem:[#allocation3 + $0x12] ss:$4 sm:$0x3]  ;;  %v1140_v35 = vld [vmem:[#allocation3 + $0x1a] ss:$4 sm:$0x3] }
  0x8a   :  { %v692_v28 = vld [vmem:[#allocation1] sm:$0xff]  ;;  %v693_v25 = vld [vmem:[#allocation1 + $0x9] sm:$0xff]  ;;  %v793_v42 = vmul.f32 %v1125_v32, %v792_v62  ;;  %v794_v47 = vmul.f32 %v1126_v37, %v792_v62  ;;  %v755_v39 = vadd.f32 %v752_v61, %v747_v23  ;;  %v756_v40 = vadd.f32 %v752_v61, %v748_v26  ;;  %v1142_v23 = vld [vmem:[#allocation3 + $0x2a] ss:$4 sm:$0x3] }
  0x8b   :  { %v696_v48 = vsel %vm245_vm0, %v692_v28, 0.0  ;;  %v697_v38 = vsel %vm245_vm0, %v693_v25, 0.0  ;;  %v757_v46 = vadd.f32 %v752_v61, %v749_v21  ;;  %v758_v49 = vadd.f32 %v752_v61, %v750_v27  ;;  %v1141_v61 = vld [vmem:[#allocation3 + $0x22] ss:$4 sm:$0x3] }
  0x8c   :  { %v698_v45 = vadd.f32 %v697_v38, %v696_v48  ;;  %v759_v50 = vmax.f32 %v753_v31, 0.0  ;;  %v760_v51 = vmax.f32 %v754_v41, 0.0  ;;  %v761_v52 = vmax.f32 %v755_v39, 0.0  ;;  %v1143_v31 = vld [vmem:[#allocation3 + $0x3] ss:$4 sm:$0x3] }
  0x8d   :  { %v762_v43 = vmax.f32 %v756_v40, 0.0  ;;  %v795_v54 = vmul.f32 %v1127_v53, %v792_v62  ;;  %v763_v55 = vmax.f32 %v757_v46, 0.0  ;;  %v764_v56 = vmax.f32 %v758_v49, 0.0  ;;  %v1144_v32 = vld [vmem:[#allocation3 + $0xb] ss:$4 sm:$0x3] }
  0x8e   :  { %699 = vadd.xlane.f32.xlu2 %v698_v45  ;;  %771 = vst [vmem:[#allocation1] ss:$9 sm:$0xff] %v759_v50  ;;  %v796_v0 = vmul.f32 %v1128_v57, %v792_v62  ;;  %v797_v1 = vmul.f32 %v1129_v58, %v792_v62  ;;  %v798_v3 = vmul.f32 %v1130_v2, %v792_v62  ;;  %v814_v5 = vstv %s1690_s3  ;;  %v1145_v48 = vld [vmem:[#allocation3 + $0x13] ss:$4 sm:$0x3]  ;;  %s1055_s3 = sshll.u32 %s1799_s11, 4  ;;  %s1056_s3 = int_to_ptr.hbm [resolvable:$true] %s1055_s3 }
  0x8f   :  { %773 = vst [vmem:[#allocation1 + $0x1] ss:$9 sm:$0xff] %v760_v51  ;;  %v828_v59 = vstv %s1696_s12  ;;  %v801_v60 = vmul.f32 %v1131_v33, %v800_v4  ;;  %v802_v6 = vmul.f32 %v1132_v34, %v800_v4  ;;  %v803_v63 = vmul.f32 %v1133_v7, %v800_v4  ;;  %v1146_v39 = vld [vmem:[#allocation3 + $0x1b] ss:$4 sm:$0x3] }
  0x90   :  { %775 = vst [vmem:[#allocation1 + $0x2] ss:$9 sm:$0xff] %v761_v52  ;;  %v804_v9 = vmul.f32 %v1134_v8, %v800_v4  ;;  %v805_v10 = vmul.f32 %v1135_v15, %v800_v4  ;;  %v806_v12 = vmul.f32 %v1136_v11, %v800_v4  ;;  %v815_v17 = vmul.f32 %v1137_v16, %v814_v5  ;;  %v1147_v45 = vld [vmem:[#allocation3 + $0x23] ss:$4 sm:$0x3] }
  0x91   :  { %777 = vst [vmem:[#allocation1 + $0x3] ss:$9 sm:$0xff] %v762_v43  ;;  %v816_v18 = vmul.f32 %v1138_v44, %v814_v5  ;;  %v807_v13 = vadd.f32 %v801_v60, %v793_v42  ;;  %v808_v14 = vadd.f32 %v802_v6, %v794_v47  ;;  %v809_v20 = vadd.f32 %v803_v63, %v795_v54  ;;  %v1148_v49 = vld [vmem:[#allocation3 + $0x2b] ss:$4 sm:$0x3]  ;;  %v904_v44 = vld [vmem:[#allocation10] sm:$0xff] }
  0x92   :  { %779 = vst [vmem:[#allocation1 + $0x4] ss:$9 sm:$0xff] %v763_v55  ;;  %v810_v19 = vadd.f32 %v804_v9, %v796_v0  ;;  %v811_v24 = vadd.f32 %v805_v10, %v797_v1  ;;  %v812_v29 = vadd.f32 %v806_v12, %v798_v3  ;;  %v817_v22 = vmul.f32 %v1139_v30, %v814_v5  ;;  %v937_v30 = vld [vmem:[%s1793_s5 + $0x20] sm:$0xff] }
  0x93   :  { %781 = vst [vmem:[#allocation1 + $0x5] ss:$9 sm:$0xff] %v764_v56  ;;  %v818_v36 = vmul.f32 %v1140_v35, %v814_v5  ;;  %v819_v62 = vmul.f32 %v1141_v61, %v814_v5  ;;  %v820_v26 = vmul.f32 %v1142_v23, %v814_v5  ;;  %v821_v21 = vadd.f32 %v815_v17, %v807_v13  ;;  %v936_v35 = vld [vmem:[%s1793_s5 + $0x18] sm:$0xff] }
  0x94   :  { %v822_v27 = vadd.f32 %v816_v18, %v808_v14  ;;  %v823_v28 = vadd.f32 %v817_v22, %v809_v20  ;;  %v829_v41 = vmul.f32 %v1143_v31, %v828_v59  ;;  %v830_v42 = vmul.f32 %v1144_v32, %v828_v59  ;;  %928 = vmatpush.msra.mxu0 %v904_v44  ;;  %v940_v14 = vld [vmem:[%s1793_s5 + $0x38] sm:$0xff]  ;;  %v939_v20 = vld [vmem:[%s1793_s5 + $0x30] sm:$0xff] }
  0x95   :  { %v824_v25 = vadd.f32 %v818_v36, %v810_v19  ;;  %v825_v37 = vadd.f32 %v819_v62, %v811_v24  ;;  %v826_v47 = vadd.f32 %v820_v26, %v812_v29  ;;  %v831_v38 = vmul.f32 %v1145_v48, %v828_v59  ;;  %957 = vmatpush.msra.mxu1 %v940_v14  ;;  %v938_v24 = vld [vmem:[%s1793_s5 + $0x28] sm:$0xff]  ;;  %v935_v62 = vld [vmem:[%s1793_s5 + $0x10] sm:$0xff] }
  0x96   :  { %v832_v40 = vmul.f32 %v1146_v39, %v828_v59  ;;  %v833_v46 = vmul.f32 %v1147_v45, %v828_v59  ;;  %v834_v50 = vmul.f32 %v1148_v49, %v828_v59  ;;  %v835_v51 = vadd.f32 %v829_v41, %v821_v21  ;;  %v934_v48 = vld [vmem:[%s1793_s5 + $0x8] sm:$0xff]  ;;  %v978_v39 = vld [vmem:[%s1795_s7 + $0x38] sm:$0xff] }
  0x97   :  { %v836_v52 = vadd.f32 %v830_v42, %v822_v27  ;;  %v837_v43 = vadd.f32 %v831_v38, %v823_v28  ;;  %v842_v54 = vstv %s1705_s13  ;;  %v1286_v17 = vmov 0.0   ;;  %958 = vmatpush.msra.mxu1 %v939_v20  ;;  %v933_v38 = vld [vmem:[%s1793_s5] sm:$0xff]  ;;  %994 = vmatpush.msra.mxu2 %v978_v39  ;;  %v976_v45 = vld [vmem:[%s1795_s7 + $0x28] sm:$0xff] }
  0x98   :  { %v838_v53 = vadd.f32 %v832_v40, %v824_v25  ;;  %v839_v55 = vadd.f32 %v833_v46, %v825_v37  ;;  %v840_v56 = vadd.f32 %v834_v50, %v826_v47  ;;  %v843_v57 = vadd.f32 %v842_v54, %v835_v51  ;;  %112 = vst.msk [vmem:[#allocation2] sm:$0x3f] %vm111_vm1, %v1286_v17  ;;  %v977_v40 = vld [vmem:[%s1795_s7 + $0x30] sm:$0xff]  ;;  %v975_v46 = vld [vmem:[%s1795_s7 + $0x20] sm:$0xff]  ;;  %v1119_v49 = vld [vmem:[#allocation12] ss:$0 sm:$0xff] }
  0x99   :  { %v844_v0 = vadd.f32 %v842_v54, %v836_v52  ;;  %v845_v2 = vadd.f32 %v842_v54, %v837_v43  ;;  %959 = vmatpush.msra.mxu1 %v938_v24  ;;  %vm892_vm7 = vcmask 48128   ;;  %vm894_vm8 = vcmask 56320   ;;  %995 = vmatpush.msra.mxu2 %v977_v40  ;;  %v974_v52 = vld [vmem:[%s1795_s7 + $0x18] sm:$0xff]  ;;  %v973_v43 = vld [vmem:[%s1795_s7 + $0x10] sm:$0xff] }
  0x9a   :  { %v782_v58 = vld [vmem:[#allocation1] sm:$0xff]  ;;  %v783_v1 = vld [vmem:[#allocation1 + $0x9] sm:$0xff]  ;;  %v846_v3 = vadd.f32 %v842_v54, %v838_v53  ;;  %v847_v33 = vadd.f32 %v842_v54, %v839_v55  ;;  %v848_v60 = vadd.f32 %v842_v54, %v840_v56  ;;  %v849_v34 = vmax.f32 %v843_v57, 0.0 }
  0x9b   :  { %v786_v4 = vsel %vm245_vm0, %v782_v58, 0.0  ;;  %v787_v5 = vsel %vm245_vm0, %v783_v1, 0.0  ;;  %v850_v6 = vmax.f32 %v844_v0, 0.0  ;;  %v851_v7 = vmax.f32 %v845_v2, 0.0  ;;  %960 = vmatpush.msra.mxu1 %v937_v30  ;;  %996 = vmatpush.msra.mxu2 %v976_v45  ;;  %v972_v53 = vld [vmem:[%s1795_s7 + $0x8] sm:$0xff]  ;;  %v971_v54 = vld [vmem:[%s1795_s7] sm:$0xff] }
  0x9c   :  { %v788_v59 = vadd.f32 %v787_v5, %v786_v4  ;;  %v852_v63 = vmax.f32 %v846_v3, 0.0  ;;  %v853_v8 = vmax.f32 %v847_v33, 0.0  ;;  %861 = vst [vmem:[#allocation1] ss:$9 sm:$0xff] %v849_v34  ;;  %v854_v9 = vmax.f32 %v848_v60, 0.0  ;;  %v1011_v1 = vld [vmem:[%s1797_s9 + $0x18] sm:$0xff] }
  0x9d   :  { %863 = vst [vmem:[#allocation1 + $0x1] ss:$9 sm:$0xff] %v850_v6  ;;  %961 = vmatpush.msra.mxu1 %v936_v35  ;;  %vm909_vm9 = vcmask 64512   ;;  %997 = vmatpush.msra.mxu2 %v975_v46  ;;  %vm945_vm10 = vcmask 523264   ;;  %v1120_v55 = vld [vmem:[%s1794_s6] ss:$0 sm:$0xff] }
  0x9e   :  { %789 = vadd.xlane.f32.xlu0 %v788_v59  ;;  %865 = vst [vmem:[#allocation1 + $0x2] ss:$9 sm:$0xff] %v851_v7  ;;  %1032 = vmatpush.msra.mxu3 %v1011_v1  ;;  %v1010_v2 = vld [vmem:[%s1797_s9 + $0x10] sm:$0xff]  ;;  %v1009_v3 = vld [vmem:[%s1797_s9 + $0x8] sm:$0xff]  ;;  %v1008_v4 = vld [vmem:[%s1797_s9] sm:$0xff]  ;;  %vm1016_vm11 = vcmask 261120  }
  0x9f   :  { %867 = vst [vmem:[#allocation1 + $0x3] ss:$9 sm:$0xff] %v852_v63  ;;  %962 = vmatpush.msra.mxu1 %v935_v62  ;;  %v881_v25 = vld [vmem:[#allocation2] sm:$0x3f]  ;;  %998 = vmatpush.msra.mxu2 %v974_v52  ;;  %v1121_v5 = vld [vmem:[%s1796_s8] ss:$0 sm:$0xff] }
  0xa0   :  { %869 = vst [vmem:[#allocation1 + $0x4] ss:$9 sm:$0xff] %v853_v8  ;;  %1033 = vmatpush.msra.mxu3 %v1010_v2  ;;  %v1122_v6 = vld [vmem:[%s1798_s10] ss:$0 sm:$0xff]  ;;  %v1040_v8 = vlaneseq  ;;  %s1287_s9 = smov [#allocation13]   ;;  %vm1046_vm13 = vcmask 259072  }
  0xa1   :  { %871 = vst [vmem:[#allocation1 + $0x5] ss:$9 sm:$0xff] %v854_v9  ;;  %963 = vmatpush.msra.mxu1 %v934_v48  ;;  %999 = vmatpush.msra.mxu2 %v973_v43  ;;  %s1053_s29 = sshll.u32 %s1287_s9, 4  ;;  %s1054_s29 = int_to_ptr.vmem [resolvable:$true] %s1053_s29 }
  0xa2   :  { %1034 = vmatpush.msra.mxu3 %v1009_v3 }
  0xa3   :  { %964 = vmatpush.msra.mxu1 %v933_v38  ;;  %1000 = vmatpush.msra.mxu2 %v972_v53 }
  0xa4   :  { %1035 = vmatpush.msra.mxu3 %v1008_v4 }
  0xa5   :  { %1001 = vmatpush.msra.mxu2 %v971_v54 }
  0xa8   :  { %v872_v15 = vld [vmem:[#allocation1] sm:$0xff]  ;;  %v873_v10 = vld [vmem:[#allocation1 + $0x9] sm:$0xff] }
  0xa9   :  { %v876_v11 = vsel %vm245_vm0, %v872_v15, 0.0  ;;  %v877_v12 = vsel %vm245_vm0, %v873_v10, 0.0  ;;  %v1041_v15 = vand.u32 127, %v1040_v8 }
  0xaa   :  { %v878_v16 = vadd.f32 %v877_v12, %v876_v11 }
  0xab   :  { %vm1042_vm12 = vcmp.lt.s32.totalorder %v1041_v15, 16 }
  0xac   :  { %879 = vadd.xlane.f32.xlu1 %v878_v16 }
  0xb4   :  { %v250_v18 = vpop.xlane.xlu0 %249 }
  0xd2   :  { %v430_v13 = vpop.xlane.xlu1 %429 }
  0xdf   :  { %v340_v19 = vpop.xlane.xlu0 %339 }
  0xe0   :  { %v883_v22 = vsel %vm882_vm2, %v250_v18, %v340_v19 }
  0xe1   :  { %v885_v61 = vsel %vm884_vm3, %v883_v22, %v430_v13 }
  0xe2   :  { %v520_v36 = vpop.xlane.xlu1 %519 }
  0xe3   :  { %v887_v23 = vsel %vm886_vm4, %v885_v61, %v520_v36 }
  0xf1   :  { %v610_v29 = vpop.xlane.xlu2 %609 }
  0xf2   :  { %v889_v21 = vsel %vm888_vm5, %v887_v23, %v610_v29 }
 0x101   :  { %v700_v26 = vpop.xlane.xlu2 %699 }
 0x102   :  { %v891_v28 = vsel %vm890_vm6, %v889_v21, %v700_v26 }
 0x111   :  { %v790_v27 = vpop.xlane.xlu0 %789 }
 0x112   :  { %v893_v31 = vsel %vm892_vm7, %v891_v28, %v790_v27 }
 0x11f   :  { %v880_v41 = vpop.xlane.xlu1 %879 }
 0x120   :  { %v895_v32 = vsel %vm894_vm8, %v893_v31, %v880_v41 }
 0x121   :  { %v896_v42 = vadd.f32 %v895_v32, %v881_v25 }
 0x123   :  { %898 = vst.msk [vmem:[#allocation2] sm:$0x3f] %vm111_vm1, %v896_v42 }
 0x12a   :  { %v902_v37 = vld [vmem:[#allocation2] sm:$0x3f] }
 0x12b   :  { %v903_v47 = vmul.f32 0.00390625, %v902_v37 }
 0x12d   :  { %1106 = vmatmul.msk.f32.vlgmr.msra.gmra.mxu0 %vm909_vm9, %v903_v47 }
 0x1aa   :  { %v930_v50 = vpop.f32.mrf.mxu0 }
 0x1ab   :  { %v931_v51 = vadd.f32 %v1119_v49, %v930_v50 }
 0x1ad   :  { %1107 = vmatmul.msk.f32.vlgmr.msra.gmra.mxu1 %vm945_vm10, %v931_v51 }
 0x22a   :  { %v966_v56 = vpop.f32.mrf.mxu1 }
 0x22b   :  { %v967_v57 = vadd.f32 %v1120_v55, %v966_v56 }
 0x22d   :  { %v969_v0 = vmul.f32 0.02, %v967_v57 }
 0x22f   :  { %v970_v58 = vmax.f32 %v967_v57, %v969_v0 }
 0x231   :  { %1108 = vmatmul.msk.f32.vlgmr.msra.gmra.mxu2 %vm945_vm10, %v970_v58 }
 0x2b4   :  { %v1003_v33 = vpop.f32.mrf.mxu2 }
 0x2b5   :  { %v1004_v60 = vadd.f32 %v1121_v5, %v1003_v33 }
 0x2b7   :  { %v1006_v59 = vmul.f32 0.02, %v1004_v60 }
 0x2b9   :  { %v1007_v34 = vmax.f32 %v1004_v60, %v1006_v59 }
 0x2bb   :  { %1109 = vmatmul.msk.f32.vlgmr.msra.gmra.mxu3 %vm1016_vm11, %v1007_v34 }
 0x33e   :  { %v1037_v7 = vpop.f32.mrf.mxu3 }
 0x33f   :  { %v1038_v63 = vadd.f32 %v1122_v6, %v1037_v7 }
 0x341   :  { %v1043_v9 = vmul.f32 1.442695, %v1038_v63 }
 0x343   :  { %1123 = vpow2.f32 %v1043_v9 }
 0x349   :  { %v1124_v10 = vpop.eup %1123 }
 0x34a   :  { %v1045_v11 = vsel %vm1042_vm12, %v1038_v63, %v1124_v10 }
 0x34b   :  { %1047 = vst.msk [vmem:[#allocation13] sm:$0x3f] %vm1046_vm13, %v1045_v11 }
 0x34c   :  { %1058 = dma.vmem_to_hbm [thread:$0]  %s1054_s29, 128, %s1056_s3, [#allocation5]  }
 0x34d   :  { %1277 = dma.done.wait [#allocation5], 128  }
 0x34e   :  { %1278 = vsyncadd [#allocation5], 4294967168 }
 0x34f   :  { %1063 = vsyncpa [#allocation4], 1 }
 0x350   :  { %1064 = vsyncpa [#allocation11], 1 }
 0x351   :  { %1065 = vsyncpa [#allocation5], 1 }
 0x352   :  { %1066 = vsyncpa [#allocation6], 1 }
 0x353   :  { %1067 = vsyncpa [#allocation7], 1 }

</bundles_post_ra>
